<compile_context>
chip_gen: v7x
topology: tpu7x:2x2x1
jax: 0.10.0
libtpu: 0.0.40
codegen_flags: <defaults>
</compile_context>

<pallas_src>
import jax
import jax.numpy as jnp
from jax.experimental import pallas as pl
from jax.experimental.pallas import tpu as pltpu

EPS = 1e-5                       # PyTorch BatchNorm2d default eps
MATMUL_DTYPE = jnp.bfloat16      # MXU operand dtype (accumulation stays f32)
LANE_MARGIN = 128                # lane-aligned left margin of the conv scratch


# ----------------------------- fused kernel --------------------------------
def make_dense_block_kernel(nb_layers, in_planes, growth, S, taps, margin):
    """Fused BN + ReLU + Conv3x3(SAME) + concat for the whole DenseBlock.

    Per grid step (bpg batch elements), refs are:
      x_ref     : [bpg, C0, S]              raw input, padded-flat spatial
      mask_ref  : [1, S]                    1.0 at image interior, 0.0 at ring
      scale_ref : [L, cin_max, 1]           folded BN scale  (f32)
      shift_ref : [L, cin_max, 1]           folded BN shift  (f32)
      w_ref     : [L, 9, growth, cin_max]   per-tap transposed weights (bf16)
      o_ref     : [bpg, C_total, S]         the growing concat buffer (f32)
      pbuf_ref  : [bpg, cin_max, PB]        bf16 conv-input scratch with margins
    """

    def kernel(x_ref, mask_ref, scale_ref, shift_ref, w_ref, o_ref, pbuf_ref):
        bpg = x_ref.shape[0]

        # Zero the conv-input scratch every grid step: margins feeding the
        # shifted views must be finite/zero.  (Never gate this on
        # program_id==0 -- each megacore shard needs its own init.)
        pbuf_ref[...] = jnp.zeros_like(pbuf_ref)

        interior = mask_ref[...] > 0.5          # (1, S) SAME-padding ring mask

        # Seed the VMEM-resident concat buffer with the input channels.
        o_ref[:, :in_planes, :] = x_ref[...]

        for b in range(bpg):
            cin = in_planes
            for li in range(nb_layers):
                # Folded BatchNorm + ReLU in f32 on the VPU; zero the padding
                # ring; cast to bf16 only at the MXU boundary.
                act = o_ref[b, :cin, :]                              # (cin, S)
                a = jnp.maximum(
                    act * scale_ref[li, :cin, :] + shift_ref[li, :cin, :], 0.0)
                a = jnp.where(interior, a, 0.0)
                pbuf_ref[b, :cin, margin:margin + S] = a.astype(pbuf_ref.dtype)

                # 3x3 conv = 9 accumulated MXU matmuls on lane-shifted views
                # (no lane-axis im2col concat); N = S (>=256 lanes) per dot.
                acc = jnp.zeros((growth, S), jnp.float32)
                for t, off in enumerate(taps):
                    w_t = w_ref[li, t, :, :cin]                      # (g, cin)
                    slab = pbuf_ref[b, :cin, margin + off:margin + off + S]
                    acc = acc + jnp.dot(w_t, slab,
                                        preferred_element_type=jnp.float32)

                # New channels: lane-dense store into their concat slice.
                o_ref[b, cin:cin + growth, :] = acc
                cin += growth

    return kernel


# ----------------------------- pallas wrapper -------------------------------
def _pick_batch_block(n, per_image_bytes, max_block=8, budget=8 << 20):
    """Largest divisor of n that fits the VMEM budget and keeps >=2 grid steps
    (so both v7x TensorCores stay busy)."""
    cap = max(1, min(max_block, budget // max(per_image_bytes, 1)))
    best = 1
    for b in range(1, n + 1):
        if n % b == 0 and b <= cap and (n // b >= 2 or n == 1):
            best = b
    return best


def dense_block_pallas(x_nchw, params):
    N, C0, H, W = x_nchw.shape
    L = len(params)
    growth = params[0]["w"].shape[-1]
    c_total = C0 + L * growth
    cin_max = C0 + (L - 1) * growth
    Hp, Wp = H + 2, W + 2
    S = Hp * Wp                                   # flattened padded spatial
    margin = LANE_MARGIN
    max_off = Wp + 1                              # largest positive tap offset
    PB = -(-(margin + S + max_off) // 128) * 128  # scratch lane length

    # ---- layout plumbing (plain XLA outside the kernel) ----
    # NCHW -> zero-pad the spatial ring -> flatten spatial onto lanes.
    x_flat = jnp.pad(x_nchw.astype(jnp.float32),
                     ((0, 0), (0, 0), (1, 1), (1, 1))).reshape(N, C0, S)

    iy = jnp.arange(Hp)[:, None]
    ix = jnp.arange(Wp)[None, :]
    interior = (iy >= 1) & (iy <= H) & (ix >= 1) & (ix <= W)
    mask = interior.reshape(1, S).astype(jnp.float32)

    # ---- stacked, host-folded parameters (3 arrays regardless of depth) ----
    scales, shifts, wtaps = [], [], []
    for li, p in enumerate(params):
        cin = C0 + li * growth
        sc = p["gamma"] * jax.lax.rsqrt(p["var"] + EPS)          # (cin,)
        sh = p["beta"] - p["mean"] * sc
        scales.append(jnp.pad(sc, (0, cin_max - cin))[:, None])
        shifts.append(jnp.pad(sh, (0, cin_max - cin))[:, None])
        # HWIO (3,3,cin,growth) -> per-tap transposed (9, growth, cin), pad cin.
        wt = jnp.transpose(p["w"].reshape(9, cin, growth), (0, 2, 1))
        wtaps.append(jnp.pad(wt, ((0, 0), (0, 0), (0, cin_max - cin))))
    scale_all = jnp.stack(scales).astype(jnp.float32)            # (L, cin_max, 1)
    shift_all = jnp.stack(shifts).astype(jnp.float32)            # (L, cin_max, 1)
    w_all = jnp.stack(wtaps).astype(MATMUL_DTYPE)                # (L, 9, g, cin_max)

    # Tap lane offsets in the padded flat layout, (dy, dx) row-major to match
    # the (9, growth, cin) weight stacking above.
    taps = [(dy - 1) * Wp + (dx - 1) for dy in range(3) for dx in range(3)]

    # Batch slab per grid step.
    per_img = (c_total + C0) * S * 4 * 2 + cin_max * PB * 2
    bpg = _pick_batch_block(N, per_img)
    grid = (N // bpg,)

    kernel = make_dense_block_kernel(L, C0, growth, S, taps, margin)

    # VMEM budget: double-buffered x/out blocks + resident params + scratch,
    # with headroom.  Capped at 48 MiB so this also fits v7x (64 MiB physical);
    # on v5e/v6e (128 MiB) raise the cap when growing the batch slab.
    block_bytes = (2 * bpg * C0 * S * 4 + 2 * bpg * c_total * S * 4
                   + 2 * (w_all.size * 2 + scale_all.size * 4
                          + shift_all.size * 4 + mask.size * 4)
                   + bpg * cin_max * PB * 2)
    vmem_limit = int(min(48 * 1024 * 1024,
                         max(16 * 1024 * 1024, 8 * block_bytes)))

    flops = 0
    cin = C0
    for _ in range(L):
        flops += 2 * N * H * W * 9 * cin * growth + 4 * N * S * cin
        cin += growth
    bytes_accessed = ((x_flat.size + N * c_total * S + mask.size
                       + scale_all.size + shift_all.size) * 4
                      + w_all.size * 2)

    out_flat = pl.pallas_call(
        kernel,
        out_shape=jax.ShapeDtypeStruct((N, c_total, S), jnp.float32),
        grid=grid,
        in_specs=[
            pl.BlockSpec((bpg, C0, S), lambda n: (n, 0, 0)),
            pl.BlockSpec((1, S), lambda n: (0, 0)),
            pl.BlockSpec((L, cin_max, 1), lambda n: (0, 0, 0)),
            pl.BlockSpec((L, cin_max, 1), lambda n: (0, 0, 0)),
            pl.BlockSpec((L, 9, growth, cin_max), lambda n: (0, 0, 0, 0)),
        ],
        out_specs=pl.BlockSpec((bpg, c_total, S), lambda n: (n, 0, 0)),
        scratch_shapes=[pltpu.VMEM((bpg, cin_max, PB), MATMUL_DTYPE)],
        compiler_params=pltpu.CompilerParams(
            dimension_semantics=("parallel",),
            vmem_limit_bytes=vmem_limit),
        cost_estimate=pl.CostEstimate(flops=int(flops), transcendentals=0,
                                      bytes_accessed=int(bytes_accessed)),
    )(x_flat, mask, scale_all, shift_all, w_all)

    # Drop the SAME-padding ring: (N, C_total, Hp*Wp) -> NCHW (N, C_total, H, W)
    return out_flat.reshape(N, c_total, Hp, Wp)[:, :, 1:H + 1, 1:W + 1]


@jax.jit
def dense_block_forward(x_nchw, params):
    return dense_block_pallas(x_nchw, params)


# ----------------------------- pure-JAX reference ---------------------------
def dense_block_reference(x_nchw, params):
    x = jnp.transpose(x_nchw, (0, 2, 3, 1))      # NHWC
    for p in params:
        a = (x - p["mean"]) * jax.lax.rsqrt(p["var"] + EPS) * p["gamma"] + p["beta"]
        a = jnp.maximum(a, 0.0)
        out = jax.lax.conv_general_dilated(
            a, p["w"], window_strides=(1, 1), padding="SAME",
            dimension_numbers=("NHWC", "HWIO", "NHWC"))
        x = jnp.concatenate([x, out], axis=-1)
    return jnp.transpose(x, (0, 3, 1, 2))


# ----------------------------- parameter init -------------------------------
def init_params(key, nb_layers, in_planes, growth_rate):
    """Deterministic synthetic parameters (shapes from DenseBlock.__init__)."""
    params = []
    c = in_planes
    for _ in range(nb_layers):
        key, k1, k2, k3, k4, k5 = jax.random.split(key, 6)
        fan = 3 * 3 * c
        w = jax.random.normal(k1, (3, 3, c, growth_rate), jnp.float32) * (2.0 / fan) ** 0.5
        params.append(dict(
            w=w,                                                   # HWIO
            gamma=1.0 + 0.1 * jax.random.normal(k2, (c,), jnp.float32),
            beta=0.1 * jax.random.normal(k3, (c,), jnp.float32),
            mean=0.1 * jax.random.normal(k4, (c,), jnp.float32),
            var=1.0 + 0.1 * jax.random.uniform(k5, (c,), jnp.float32),
        ))
        c += growth_rate
    return params


if __name__ == "__main__":
    # Small DenseBlock: nb_layers=3, in_planes=4, growth_rate=4, dropRate=0.0
    nb_layers, in_planes, growth_rate = 3, 4, 4
    N, H, W = 2, 16, 16

    key = jax.random.PRNGKey(0)
    key, kx = jax.random.split(key)
    x_nchw = jax.random.normal(kx, (N, in_planes, H, W), jnp.float32)  # NCHW
    params = init_params(key, nb_layers, in_planes, growth_rate)

    y = jax.block_until_ready(dense_block_forward(x_nchw, params))
    y_ref = jax.block_until_ready(dense_block_reference(x_nchw, params))

    assert y.shape == (N, in_planes + nb_layers * growth_rate, H, W), y.shape
    err = float(jnp.max(jnp.abs(y - y_ref)))
    # bf16 MXU operands (f32 accumulation) -> relaxed tolerance vs. f32 reference.
    assert jnp.allclose(y, y_ref, atol=5e-2, rtol=5e-2), f"max_abs_err={err}"
    print("KERNEL_OK")
</pallas_src>

<mosaic_0001>
module attributes {stable_mosaic.version = 11 : i64} {
  func.func @kernel(%arg0: i32, %arg1: memref<1x4x324xf32, #tpu.memory_space<vmem>>, %arg2: memref<1x324xf32, #tpu.memory_space<vmem>>, %arg3: memref<3x12x1xf32, #tpu.memory_space<vmem>>, %arg4: memref<3x12x1xf32, #tpu.memory_space<vmem>>, %arg5: memref<3x9x4x12xbf16, #tpu.memory_space<vmem>>, %arg6: memref<1x16x324xf32, #tpu.memory_space<vmem>>, %arg7: memref<1x12x512xbf16, #tpu.memory_space<vmem>>) attributes {dimension_semantics = [#tpu.dimension_semantics<parallel>], iteration_bounds = array<i64: 2>, scalar_prefetch = 0 : i64, scratch_operands = 1 : i64, tpu.core_type = #tpu.core_type<tc>, window_params = [{transform_indices = @transform_0, window_bounds = array<i64: 1, 4, 324>}, {pipeline_mode = #tpu.pipeline_mode<synchronous>, transform_indices = @transform_1, window_bounds = array<i64: 1, 324>}, {pipeline_mode = #tpu.pipeline_mode<synchronous>, transform_indices = @transform_2, window_bounds = array<i64: 3, 12, 1>}, {pipeline_mode = #tpu.pipeline_mode<synchronous>, transform_indices = @transform_3, window_bounds = array<i64: 3, 12, 1>}, {pipeline_mode = #tpu.pipeline_mode<synchronous>, transform_indices = @transform_4, window_bounds = array<i64: 3, 9, 4, 12>}, {transform_indices = @transform_5, window_bounds = array<i64: 1, 16, 324>}]} {
    %cst = arith.constant 0.000000e+00 : bf16
    %0 = vector.broadcast %cst : bf16 to vector<1x12x512xbf16>
    %c0 = arith.constant 0 : index
    %c0_0 = arith.constant 0 : index
    %c0_1 = arith.constant 0 : index
    %1 = vector.load %arg7[%c0, %c0_0, %c0_1] : memref<1x12x512xbf16, #tpu.memory_space<vmem>>, vector<1x12x512xbf16>
    tpu.vector_store %arg7[%c0, %c0_0, %c0_1], %0 {strides = array<i32>} : memref<1x12x512xbf16, #tpu.memory_space<vmem>>, vector<1x12x512xbf16>,
    %c0_2 = arith.constant 0 : index
    %c0_3 = arith.constant 0 : index
    %2 = vector.load %arg2[%c0_2, %c0_3] : memref<1x324xf32, #tpu.memory_space<vmem>>, vector<1x324xf32>
    %cst_4 = arith.constant 5.000000e-01 : f32
    %3 = vector.broadcast %cst_4 : f32 to vector<1x324xf32>
    %4 = arith.cmpf ogt, %2, %3 : vector<1x324xf32>
    %c0_5 = arith.constant 0 : index
    %c0_6 = arith.constant 0 : index
    %c0_7 = arith.constant 0 : index
    %5 = vector.load %arg1[%c0_5, %c0_6, %c0_7] : memref<1x4x324xf32, #tpu.memory_space<vmem>>, vector<1x4x324xf32>
    %c0_8 = arith.constant 0 : index
    %c0_9 = arith.constant 0 : index
    %c0_10 = arith.constant 0 : index
    %6 = vector.load %arg6[%c0_8, %c0_9, %c0_10] : memref<1x16x324xf32, #tpu.memory_space<vmem>>, vector<1x4x324xf32>
    tpu.vector_store %arg6[%c0_8, %c0_9, %c0_10], %5 {strides = array<i32>} : memref<1x16x324xf32, #tpu.memory_space<vmem>>, vector<1x4x324xf32>,
    %c0_11 = arith.constant 0 : index
    %c0_12 = arith.constant 0 : index
    %c0_13 = arith.constant 0 : index
    %7 = vector.load %arg6[%c0_11, %c0_12, %c0_13] : memref<1x16x324xf32, #tpu.memory_space<vmem>>, vector<1x4x324xf32>
    %8 = vector.shape_cast %7 : vector<1x4x324xf32> to vector<4x324xf32>
    %c0_14 = arith.constant 0 : index
    %c0_15 = arith.constant 0 : index
    %c0_16 = arith.constant 0 : index
    %9 = vector.load %arg3[%c0_14, %c0_15, %c0_16] : memref<3x12x1xf32, #tpu.memory_space<vmem>>, vector<1x4x1xf32>
    %10 = vector.shape_cast %9 : vector<1x4x1xf32> to vector<4x1xf32>
    %11 = vector.broadcast %10 : vector<4x1xf32> to vector<4x324xf32>
    %12 = arith.mulf %8, %11 : vector<4x324xf32>
    %c0_17 = arith.constant 0 : index
    %c0_18 = arith.constant 0 : index
    %c0_19 = arith.constant 0 : index
    %13 = vector.load %arg4[%c0_17, %c0_18, %c0_19] : memref<3x12x1xf32, #tpu.memory_space<vmem>>, vector<1x4x1xf32>
    %14 = vector.shape_cast %13 : vector<1x4x1xf32> to vector<4x1xf32>
    %15 = vector.broadcast %14 : vector<4x1xf32> to vector<4x324xf32>
    %16 = arith.addf %12, %15 : vector<4x324xf32>
    %cst_20 = arith.constant 0.000000e+00 : f32
    %17 = vector.broadcast %cst_20 : f32 to vector<4x324xf32>
    %18 = arith.maximumf %16, %17 : vector<4x324xf32>
    %cst_21 = arith.constant 0.000000e+00 : f32
    %19 = vector.shape_cast %4 : vector<1x324xi1> to vector<1x324xi1>
    %20 = vector.broadcast %19 : vector<1x324xi1> to vector<4x324xi1>
    %21 = vector.broadcast %cst_21 : f32 to vector<4x324xf32>
    %22 = arith.select %20, %18, %21 : vector<4x324xi1>, vector<4x324xf32>
    %23 = arith.truncf %22 : vector<4x324xf32> to vector<4x324xbf16>
    %c0_22 = arith.constant 0 : index
    %c0_23 = arith.constant 0 : index
    %c128 = arith.constant 128 : index
    %24 = vector.load %arg7[%c0_22, %c0_23, %c128] : memref<1x12x512xbf16, #tpu.memory_space<vmem>>, vector<1x4x324xbf16>
    %25 = vector.shape_cast %24 : vector<1x4x324xbf16> to vector<4x324xbf16>
    %26 = vector.shape_cast %23 : vector<4x324xbf16> to vector<1x4x324xbf16>
    tpu.vector_store %arg7[%c0_22, %c0_23, %c128], %26 {strides = array<i32>} : memref<1x12x512xbf16, #tpu.memory_space<vmem>>, vector<1x4x324xbf16>,
    %cst_24 = arith.constant 0.000000e+00 : f32
    %27 = vector.broadcast %cst_24 : f32 to vector<4x324xf32>
    %c0_25 = arith.constant 0 : index
    %c0_26 = arith.constant 0 : index
    %c0_27 = arith.constant 0 : index
    %c0_28 = arith.constant 0 : index
    %28 = vector.load %arg5[%c0_25, %c0_26, %c0_27, %c0_28] : memref<3x9x4x12xbf16, #tpu.memory_space<vmem>>, vector<1x1x4x4xbf16>
    %29 = vector.shape_cast %28 : vector<1x1x4x4xbf16> to vector<4x4xbf16>
    %c0_29 = arith.constant 0 : index
    %c0_30 = arith.constant 0 : index
    %c109 = arith.constant 109 : index
    %30 = vector.load %arg7[%c0_29, %c0_30, %c109] : memref<1x12x512xbf16, #tpu.memory_space<vmem>>, vector<1x4x324xbf16>
    %31 = vector.shape_cast %30 : vector<1x4x324xbf16> to vector<4x324xbf16>
    %cst_31 = arith.constant dense<0.000000e+00> : vector<4x324xf32>
    %32 = tpu.matmul %29, %31, %cst_31 {dimension_numbers = #tpu.dot_dimension_numbers<[1], [0], [0], [1], [0, 0, 1, 1], [], []>} : vector<4x4xbf16>, vector<4x324xbf16>, vector<4x324xf32> -> vector<4x324xf32>
    %33 = arith.addf %27, %32 : vector<4x324xf32>
    %c0_32 = arith.constant 0 : index
    %c1 = arith.constant 1 : index
    %c0_33 = arith.constant 0 : index
    %c0_34 = arith.constant 0 : index
    %34 = vector.load %arg5[%c0_32, %c1, %c0_33, %c0_34] : memref<3x9x4x12xbf16, #tpu.memory_space<vmem>>, vector<1x1x4x4xbf16>
    %35 = vector.shape_cast %34 : vector<1x1x4x4xbf16> to vector<4x4xbf16>
    %c0_35 = arith.constant 0 : index
    %c0_36 = arith.constant 0 : index
    %c110 = arith.constant 110 : index
    %36 = vector.load %arg7[%c0_35, %c0_36, %c110] : memref<1x12x512xbf16, #tpu.memory_space<vmem>>, vector<1x4x324xbf16>
    %37 = vector.shape_cast %36 : vector<1x4x324xbf16> to vector<4x324xbf16>
    %cst_37 = arith.constant dense<0.000000e+00> : vector<4x324xf32>
    %38 = tpu.matmul %35, %37, %cst_37 {dimension_numbers = #tpu.dot_dimension_numbers<[1], [0], [0], [1], [0, 0, 1, 1], [], []>} : vector<4x4xbf16>, vector<4x324xbf16>, vector<4x324xf32> -> vector<4x324xf32>
    %39 = arith.addf %33, %38 : vector<4x324xf32>
    %c0_38 = arith.constant 0 : index
    %c2 = arith.constant 2 : index
    %c0_39 = arith.constant 0 : index
    %c0_40 = arith.constant 0 : index
    %40 = vector.load %arg5[%c0_38, %c2, %c0_39, %c0_40] : memref<3x9x4x12xbf16, #tpu.memory_space<vmem>>, vector<1x1x4x4xbf16>
    %41 = vector.shape_cast %40 : vector<1x1x4x4xbf16> to vector<4x4xbf16>
    %c0_41 = arith.constant 0 : index
    %c0_42 = arith.constant 0 : index
    %c111 = arith.constant 111 : index
    %42 = vector.load %arg7[%c0_41, %c0_42, %c111] : memref<1x12x512xbf16, #tpu.memory_space<vmem>>, vector<1x4x324xbf16>
    %43 = vector.shape_cast %42 : vector<1x4x324xbf16> to vector<4x324xbf16>
    %cst_43 = arith.constant dense<0.000000e+00> : vector<4x324xf32>
    %44 = tpu.matmul %41, %43, %cst_43 {dimension_numbers = #tpu.dot_dimension_numbers<[1], [0], [0], [1], [0, 0, 1, 1], [], []>} : vector<4x4xbf16>, vector<4x324xbf16>, vector<4x324xf32> -> vector<4x324xf32>
    %45 = arith.addf %39, %44 : vector<4x324xf32>
    %c0_44 = arith.constant 0 : index
    %c3 = arith.constant 3 : index
    %c0_45 = arith.constant 0 : index
    %c0_46 = arith.constant 0 : index
    %46 = vector.load %arg5[%c0_44, %c3, %c0_45, %c0_46] : memref<3x9x4x12xbf16, #tpu.memory_space<vmem>>, vector<1x1x4x4xbf16>
    %47 = vector.shape_cast %46 : vector<1x1x4x4xbf16> to vector<4x4xbf16>
    %c0_47 = arith.constant 0 : index
    %c0_48 = arith.constant 0 : index
    %c127 = arith.constant 127 : index
    %48 = vector.load %arg7[%c0_47, %c0_48, %c127] : memref<1x12x512xbf16, #tpu.memory_space<vmem>>, vector<1x4x324xbf16>
    %49 = vector.shape_cast %48 : vector<1x4x324xbf16> to vector<4x324xbf16>
    %cst_49 = arith.constant dense<0.000000e+00> : vector<4x324xf32>
    %50 = tpu.matmul %47, %49, %cst_49 {dimension_numbers = #tpu.dot_dimension_numbers<[1], [0], [0], [1], [0, 0, 1, 1], [], []>} : vector<4x4xbf16>, vector<4x324xbf16>, vector<4x324xf32> -> vector<4x324xf32>
    %51 = arith.addf %45, %50 : vector<4x324xf32>
    %c0_50 = arith.constant 0 : index
    %c4 = arith.constant 4 : index
    %c0_51 = arith.constant 0 : index
    %c0_52 = arith.constant 0 : index
    %52 = vector.load %arg5[%c0_50, %c4, %c0_51, %c0_52] : memref<3x9x4x12xbf16, #tpu.memory_space<vmem>>, vector<1x1x4x4xbf16>
    %53 = vector.shape_cast %52 : vector<1x1x4x4xbf16> to vector<4x4xbf16>
    %c0_53 = arith.constant 0 : index
    %c0_54 = arith.constant 0 : index
    %c128_55 = arith.constant 128 : index
    %54 = vector.load %arg7[%c0_53, %c0_54, %c128_55] : memref<1x12x512xbf16, #tpu.memory_space<vmem>>, vector<1x4x324xbf16>
    %55 = vector.shape_cast %54 : vector<1x4x324xbf16> to vector<4x324xbf16>
    %cst_56 = arith.constant dense<0.000000e+00> : vector<4x324xf32>
    %56 = tpu.matmul %53, %55, %cst_56 {dimension_numbers = #tpu.dot_dimension_numbers<[1], [0], [0], [1], [0, 0, 1, 1], [], []>} : vector<4x4xbf16>, vector<4x324xbf16>, vector<4x324xf32> -> vector<4x324xf32>
    %57 = arith.addf %51, %56 : vector<4x324xf32>
    %c0_57 = arith.constant 0 : index
    %c5 = arith.constant 5 : index
    %c0_58 = arith.constant 0 : index
    %c0_59 = arith.constant 0 : index
    %58 = vector.load %arg5[%c0_57, %c5, %c0_58, %c0_59] : memref<3x9x4x12xbf16, #tpu.memory_space<vmem>>, vector<1x1x4x4xbf16>
    %59 = vector.shape_cast %58 : vector<1x1x4x4xbf16> to vector<4x4xbf16>
    %c0_60 = arith.constant 0 : index
    %c0_61 = arith.constant 0 : index
    %c129 = arith.constant 129 : index
    %60 = vector.load %arg7[%c0_60, %c0_61, %c129] : memref<1x12x512xbf16, #tpu.memory_space<vmem>>, vector<1x4x324xbf16>
    %61 = vector.shape_cast %60 : vector<1x4x324xbf16> to vector<4x324xbf16>
    %cst_62 = arith.constant dense<0.000000e+00> : vector<4x324xf32>
    %62 = tpu.matmul %59, %61, %cst_62 {dimension_numbers = #tpu.dot_dimension_numbers<[1], [0], [0], [1], [0, 0, 1, 1], [], []>} : vector<4x4xbf16>, vector<4x324xbf16>, vector<4x324xf32> -> vector<4x324xf32>
    %63 = arith.addf %57, %62 : vector<4x324xf32>
    %c0_63 = arith.constant 0 : index
    %c6 = arith.constant 6 : index
    %c0_64 = arith.constant 0 : index
    %c0_65 = arith.constant 0 : index
    %64 = vector.load %arg5[%c0_63, %c6, %c0_64, %c0_65] : memref<3x9x4x12xbf16, #tpu.memory_space<vmem>>, vector<1x1x4x4xbf16>
    %65 = vector.shape_cast %64 : vector<1x1x4x4xbf16> to vector<4x4xbf16>
    %c0_66 = arith.constant 0 : index
    %c0_67 = arith.constant 0 : index
    %c145 = arith.constant 145 : index
    %66 = vector.load %arg7[%c0_66, %c0_67, %c145] : memref<1x12x512xbf16, #tpu.memory_space<vmem>>, vector<1x4x324xbf16>
    %67 = vector.shape_cast %66 : vector<1x4x324xbf16> to vector<4x324xbf16>
    %cst_68 = arith.constant dense<0.000000e+00> : vector<4x324xf32>
    %68 = tpu.matmul %65, %67, %cst_68 {dimension_numbers = #tpu.dot_dimension_numbers<[1], [0], [0], [1], [0, 0, 1, 1], [], []>} : vector<4x4xbf16>, vector<4x324xbf16>, vector<4x324xf32> -> vector<4x324xf32>
    %69 = arith.addf %63, %68 : vector<4x324xf32>
    %c0_69 = arith.constant 0 : index
    %c7 = arith.constant 7 : index
    %c0_70 = arith.constant 0 : index
    %c0_71 = arith.constant 0 : index
    %70 = vector.load %arg5[%c0_69, %c7, %c0_70, %c0_71] : memref<3x9x4x12xbf16, #tpu.memory_space<vmem>>, vector<1x1x4x4xbf16>
    %71 = vector.shape_cast %70 : vector<1x1x4x4xbf16> to vector<4x4xbf16>
    %c0_72 = arith.constant 0 : index
    %c0_73 = arith.constant 0 : index
    %c146 = arith.constant 146 : index
    %72 = vector.load %arg7[%c0_72, %c0_73, %c146] : memref<1x12x512xbf16, #tpu.memory_space<vmem>>, vector<1x4x324xbf16>
    %73 = vector.shape_cast %72 : vector<1x4x324xbf16> to vector<4x324xbf16>
    %cst_74 = arith.constant dense<0.000000e+00> : vector<4x324xf32>
    %74 = tpu.matmul %71, %73, %cst_74 {dimension_numbers = #tpu.dot_dimension_numbers<[1], [0], [0], [1], [0, 0, 1, 1], [], []>} : vector<4x4xbf16>, vector<4x324xbf16>, vector<4x324xf32> -> vector<4x324xf32>
    %75 = arith.addf %69, %74 : vector<4x324xf32>
    %c0_75 = arith.constant 0 : index
    %c8 = arith.constant 8 : index
    %c0_76 = arith.constant 0 : index
    %c0_77 = arith.constant 0 : index
    %76 = vector.load %arg5[%c0_75, %c8, %c0_76, %c0_77] : memref<3x9x4x12xbf16, #tpu.memory_space<vmem>>, vector<1x1x4x4xbf16>
    %77 = vector.shape_cast %76 : vector<1x1x4x4xbf16> to vector<4x4xbf16>
    %c0_78 = arith.constant 0 : index
    %c0_79 = arith.constant 0 : index
    %c147 = arith.constant 147 : index
    %78 = vector.load %arg7[%c0_78, %c0_79, %c147] : memref<1x12x512xbf16, #tpu.memory_space<vmem>>, vector<1x4x324xbf16>
    %79 = vector.shape_cast %78 : vector<1x4x324xbf16> to vector<4x324xbf16>
    %cst_80 = arith.constant dense<0.000000e+00> : vector<4x324xf32>
    %80 = tpu.matmul %77, %79, %cst_80 {dimension_numbers = #tpu.dot_dimension_numbers<[1], [0], [0], [1], [0, 0, 1, 1], [], []>} : vector<4x4xbf16>, vector<4x324xbf16>, vector<4x324xf32> -> vector<4x324xf32>
    %81 = arith.addf %75, %80 : vector<4x324xf32>
    %c0_81 = arith.constant 0 : index
    %c4_82 = arith.constant 4 : index
    %c0_83 = arith.constant 0 : index
    %82 = vector.load %arg6[%c0_81, %c4_82, %c0_83] : memref<1x16x324xf32, #tpu.memory_space<vmem>>, vector<1x4x324xf32>
    %83 = vector.shape_cast %82 : vector<1x4x324xf32> to vector<4x324xf32>
    %84 = vector.shape_cast %81 : vector<4x324xf32> to vector<1x4x324xf32>
    tpu.vector_store %arg6[%c0_81, %c4_82, %c0_83], %84 {strides = array<i32>} : memref<1x16x324xf32, #tpu.memory_space<vmem>>, vector<1x4x324xf32>,
    %c0_84 = arith.constant 0 : index
    %c0_85 = arith.constant 0 : index
    %c0_86 = arith.constant 0 : index
    %85 = vector.load %arg6[%c0_84, %c0_85, %c0_86] : memref<1x16x324xf32, #tpu.memory_space<vmem>>, vector<1x8x324xf32>
    %86 = vector.shape_cast %85 : vector<1x8x324xf32> to vector<8x324xf32>
    %c1_87 = arith.constant 1 : index
    %c0_88 = arith.constant 0 : index
    %c0_89 = arith.constant 0 : index
    %87 = vector.load %arg3[%c1_87, %c0_88, %c0_89] : memref<3x12x1xf32, #tpu.memory_space<vmem>>, vector<1x8x1xf32>
    %88 = vector.shape_cast %87 : vector<1x8x1xf32> to vector<8x1xf32>
    %89 = vector.broadcast %88 : vector<8x1xf32> to vector<8x324xf32>
    %90 = arith.mulf %86, %89 : vector<8x324xf32>
    %c1_90 = arith.constant 1 : index
    %c0_91 = arith.constant 0 : index
    %c0_92 = arith.constant 0 : index
    %91 = vector.load %arg4[%c1_90, %c0_91, %c0_92] : memref<3x12x1xf32, #tpu.memory_space<vmem>>, vector<1x8x1xf32>
    %92 = vector.shape_cast %91 : vector<1x8x1xf32> to vector<8x1xf32>
    %93 = vector.broadcast %92 : vector<8x1xf32> to vector<8x324xf32>
    %94 = arith.addf %90, %93 : vector<8x324xf32>
    %cst_93 = arith.constant 0.000000e+00 : f32
    %95 = vector.broadcast %cst_93 : f32 to vector<8x324xf32>
    %96 = arith.maximumf %94, %95 : vector<8x324xf32>
    %cst_94 = arith.constant 0.000000e+00 : f32
    %97 = vector.shape_cast %4 : vector<1x324xi1> to vector<1x324xi1>
    %98 = vector.broadcast %97 : vector<1x324xi1> to vector<8x324xi1>
    %99 = vector.broadcast %cst_94 : f32 to vector<8x324xf32>
    %100 = arith.select %98, %96, %99 : vector<8x324xi1>, vector<8x324xf32>
    %101 = arith.truncf %100 : vector<8x324xf32> to vector<8x324xbf16>
    %c0_95 = arith.constant 0 : index
    %c0_96 = arith.constant 0 : index
    %c128_97 = arith.constant 128 : index
    %102 = vector.load %arg7[%c0_95, %c0_96, %c128_97] : memref<1x12x512xbf16, #tpu.memory_space<vmem>>, vector<1x8x324xbf16>
    %103 = vector.shape_cast %102 : vector<1x8x324xbf16> to vector<8x324xbf16>
    %104 = vector.shape_cast %101 : vector<8x324xbf16> to vector<1x8x324xbf16>
    tpu.vector_store %arg7[%c0_95, %c0_96, %c128_97], %104 {strides = array<i32>} : memref<1x12x512xbf16, #tpu.memory_space<vmem>>, vector<1x8x324xbf16>,
    %cst_98 = arith.constant 0.000000e+00 : f32
    %105 = vector.broadcast %cst_98 : f32 to vector<4x324xf32>
    %c1_99 = arith.constant 1 : index
    %c0_100 = arith.constant 0 : index
    %c0_101 = arith.constant 0 : index
    %c0_102 = arith.constant 0 : index
    %106 = vector.load %arg5[%c1_99, %c0_100, %c0_101, %c0_102] : memref<3x9x4x12xbf16, #tpu.memory_space<vmem>>, vector<1x1x4x8xbf16>
    %107 = vector.shape_cast %106 : vector<1x1x4x8xbf16> to vector<4x8xbf16>
    %c0_103 = arith.constant 0 : index
    %c0_104 = arith.constant 0 : index
    %c109_105 = arith.constant 109 : index
    %108 = vector.load %arg7[%c0_103, %c0_104, %c109_105] : memref<1x12x512xbf16, #tpu.memory_space<vmem>>, vector<1x8x324xbf16>
    %109 = vector.shape_cast %108 : vector<1x8x324xbf16> to vector<8x324xbf16>
    %cst_106 = arith.constant dense<0.000000e+00> : vector<4x324xf32>
    %110 = tpu.matmul %107, %109, %cst_106 {dimension_numbers = #tpu.dot_dimension_numbers<[1], [0], [0], [1], [0, 0, 1, 1], [], []>} : vector<4x8xbf16>, vector<8x324xbf16>, vector<4x324xf32> -> vector<4x324xf32>
    %111 = arith.addf %105, %110 : vector<4x324xf32>
    %c1_107 = arith.constant 1 : index
    %c1_108 = arith.constant 1 : index
    %c0_109 = arith.constant 0 : index
    %c0_110 = arith.constant 0 : index
    %112 = vector.load %arg5[%c1_107, %c1_108, %c0_109, %c0_110] : memref<3x9x4x12xbf16, #tpu.memory_space<vmem>>, vector<1x1x4x8xbf16>
    %113 = vector.shape_cast %112 : vector<1x1x4x8xbf16> to vector<4x8xbf16>
    %c0_111 = arith.constant 0 : index
    %c0_112 = arith.constant 0 : index
    %c110_113 = arith.constant 110 : index
    %114 = vector.load %arg7[%c0_111, %c0_112, %c110_113] : memref<1x12x512xbf16, #tpu.memory_space<vmem>>, vector<1x8x324xbf16>
    %115 = vector.shape_cast %114 : vector<1x8x324xbf16> to vector<8x324xbf16>
    %cst_114 = arith.constant dense<0.000000e+00> : vector<4x324xf32>
    %116 = tpu.matmul %113, %115, %cst_114 {dimension_numbers = #tpu.dot_dimension_numbers<[1], [0], [0], [1], [0, 0, 1, 1], [], []>} : vector<4x8xbf16>, vector<8x324xbf16>, vector<4x324xf32> -> vector<4x324xf32>
    %117 = arith.addf %111, %116 : vector<4x324xf32>
    %c1_115 = arith.constant 1 : index
    %c2_116 = arith.constant 2 : index
    %c0_117 = arith.constant 0 : index
    %c0_118 = arith.constant 0 : index
    %118 = vector.load %arg5[%c1_115, %c2_116, %c0_117, %c0_118] : memref<3x9x4x12xbf16, #tpu.memory_space<vmem>>, vector<1x1x4x8xbf16>
    %119 = vector.shape_cast %118 : vector<1x1x4x8xbf16> to vector<4x8xbf16>
    %c0_119 = arith.constant 0 : index
    %c0_120 = arith.constant 0 : index
    %c111_121 = arith.constant 111 : index
    %120 = vector.load %arg7[%c0_119, %c0_120, %c111_121] : memref<1x12x512xbf16, #tpu.memory_space<vmem>>, vector<1x8x324xbf16>
    %121 = vector.shape_cast %120 : vector<1x8x324xbf16> to vector<8x324xbf16>
    %cst_122 = arith.constant dense<0.000000e+00> : vector<4x324xf32>
    %122 = tpu.matmul %119, %121, %cst_122 {dimension_numbers = #tpu.dot_dimension_numbers<[1], [0], [0], [1], [0, 0, 1, 1], [], []>} : vector<4x8xbf16>, vector<8x324xbf16>, vector<4x324xf32> -> vector<4x324xf32>
    %123 = arith.addf %117, %122 : vector<4x324xf32>
    %c1_123 = arith.constant 1 : index
    %c3_124 = arith.constant 3 : index
    %c0_125 = arith.constant 0 : index
    %c0_126 = arith.constant 0 : index
    %124 = vector.load %arg5[%c1_123, %c3_124, %c0_125, %c0_126] : memref<3x9x4x12xbf16, #tpu.memory_space<vmem>>, vector<1x1x4x8xbf16>
    %125 = vector.shape_cast %124 : vector<1x1x4x8xbf16> to vector<4x8xbf16>
    %c0_127 = arith.constant 0 : index
    %c0_128 = arith.constant 0 : index
    %c127_129 = arith.constant 127 : index
    %126 = vector.load %arg7[%c0_127, %c0_128, %c127_129] : memref<1x12x512xbf16, #tpu.memory_space<vmem>>, vector<1x8x324xbf16>
    %127 = vector.shape_cast %126 : vector<1x8x324xbf16> to vector<8x324xbf16>
    %cst_130 = arith.constant dense<0.000000e+00> : vector<4x324xf32>
    %128 = tpu.matmul %125, %127, %cst_130 {dimension_numbers = #tpu.dot_dimension_numbers<[1], [0], [0], [1], [0, 0, 1, 1], [], []>} : vector<4x8xbf16>, vector<8x324xbf16>, vector<4x324xf32> -> vector<4x324xf32>
    %129 = arith.addf %123, %128 : vector<4x324xf32>
    %c1_131 = arith.constant 1 : index
    %c4_132 = arith.constant 4 : index
    %c0_133 = arith.constant 0 : index
    %c0_134 = arith.constant 0 : index
    %130 = vector.load %arg5[%c1_131, %c4_132, %c0_133, %c0_134] : memref<3x9x4x12xbf16, #tpu.memory_space<vmem>>, vector<1x1x4x8xbf16>
    %131 = vector.shape_cast %130 : vector<1x1x4x8xbf16> to vector<4x8xbf16>
    %c0_135 = arith.constant 0 : index
    %c0_136 = arith.constant 0 : index
    %c128_137 = arith.constant 128 : index
    %132 = vector.load %arg7[%c0_135, %c0_136, %c128_137] : memref<1x12x512xbf16, #tpu.memory_space<vmem>>, vector<1x8x324xbf16>
    %133 = vector.shape_cast %132 : vector<1x8x324xbf16> to vector<8x324xbf16>
    %cst_138 = arith.constant dense<0.000000e+00> : vector<4x324xf32>
    %134 = tpu.matmul %131, %133, %cst_138 {dimension_numbers = #tpu.dot_dimension_numbers<[1], [0], [0], [1], [0, 0, 1, 1], [], []>} : vector<4x8xbf16>, vector<8x324xbf16>, vector<4x324xf32> -> vector<4x324xf32>
    %135 = arith.addf %129, %134 : vector<4x324xf32>
    %c1_139 = arith.constant 1 : index
    %c5_140 = arith.constant 5 : index
    %c0_141 = arith.constant 0 : index
    %c0_142 = arith.constant 0 : index
    %136 = vector.load %arg5[%c1_139, %c5_140, %c0_141, %c0_142] : memref<3x9x4x12xbf16, #tpu.memory_space<vmem>>, vector<1x1x4x8xbf16>
    %137 = vector.shape_cast %136 : vector<1x1x4x8xbf16> to vector<4x8xbf16>
    %c0_143 = arith.constant 0 : index
    %c0_144 = arith.constant 0 : index
    %c129_145 = arith.constant 129 : index
    %138 = vector.load %arg7[%c0_143, %c0_144, %c129_145] : memref<1x12x512xbf16, #tpu.memory_space<vmem>>, vector<1x8x324xbf16>
    %139 = vector.shape_cast %138 : vector<1x8x324xbf16> to vector<8x324xbf16>
    %cst_146 = arith.constant dense<0.000000e+00> : vector<4x324xf32>
    %140 = tpu.matmul %137, %139, %cst_146 {dimension_numbers = #tpu.dot_dimension_numbers<[1], [0], [0], [1], [0, 0, 1, 1], [], []>} : vector<4x8xbf16>, vector<8x324xbf16>, vector<4x324xf32> -> vector<4x324xf32>
    %141 = arith.addf %135, %140 : vector<4x324xf32>
    %c1_147 = arith.constant 1 : index
    %c6_148 = arith.constant 6 : index
    %c0_149 = arith.constant 0 : index
    %c0_150 = arith.constant 0 : index
    %142 = vector.load %arg5[%c1_147, %c6_148, %c0_149, %c0_150] : memref<3x9x4x12xbf16, #tpu.memory_space<vmem>>, vector<1x1x4x8xbf16>
    %143 = vector.shape_cast %142 : vector<1x1x4x8xbf16> to vector<4x8xbf16>
    %c0_151 = arith.constant 0 : index
    %c0_152 = arith.constant 0 : index
    %c145_153 = arith.constant 145 : index
    %144 = vector.load %arg7[%c0_151, %c0_152, %c145_153] : memref<1x12x512xbf16, #tpu.memory_space<vmem>>, vector<1x8x324xbf16>
    %145 = vector.shape_cast %144 : vector<1x8x324xbf16> to vector<8x324xbf16>
    %cst_154 = arith.constant dense<0.000000e+00> : vector<4x324xf32>
    %146 = tpu.matmul %143, %145, %cst_154 {dimension_numbers = #tpu.dot_dimension_numbers<[1], [0], [0], [1], [0, 0, 1, 1], [], []>} : vector<4x8xbf16>, vector<8x324xbf16>, vector<4x324xf32> -> vector<4x324xf32>
    %147 = arith.addf %141, %146 : vector<4x324xf32>
    %c1_155 = arith.constant 1 : index
    %c7_156 = arith.constant 7 : index
    %c0_157 = arith.constant 0 : index
    %c0_158 = arith.constant 0 : index
    %148 = vector.load %arg5[%c1_155, %c7_156, %c0_157, %c0_158] : memref<3x9x4x12xbf16, #tpu.memory_space<vmem>>, vector<1x1x4x8xbf16>
    %149 = vector.shape_cast %148 : vector<1x1x4x8xbf16> to vector<4x8xbf16>
    %c0_159 = arith.constant 0 : index
    %c0_160 = arith.constant 0 : index
    %c146_161 = arith.constant 146 : index
    %150 = vector.load %arg7[%c0_159, %c0_160, %c146_161] : memref<1x12x512xbf16, #tpu.memory_space<vmem>>, vector<1x8x324xbf16>
    %151 = vector.shape_cast %150 : vector<1x8x324xbf16> to vector<8x324xbf16>
    %cst_162 = arith.constant dense<0.000000e+00> : vector<4x324xf32>
    %152 = tpu.matmul %149, %151, %cst_162 {dimension_numbers = #tpu.dot_dimension_numbers<[1], [0], [0], [1], [0, 0, 1, 1], [], []>} : vector<4x8xbf16>, vector<8x324xbf16>, vector<4x324xf32> -> vector<4x324xf32>
    %153 = arith.addf %147, %152 : vector<4x324xf32>
    %c1_163 = arith.constant 1 : index
    %c8_164 = arith.constant 8 : index
    %c0_165 = arith.constant 0 : index
    %c0_166 = arith.constant 0 : index
    %154 = vector.load %arg5[%c1_163, %c8_164, %c0_165, %c0_166] : memref<3x9x4x12xbf16, #tpu.memory_space<vmem>>, vector<1x1x4x8xbf16>
    %155 = vector.shape_cast %154 : vector<1x1x4x8xbf16> to vector<4x8xbf16>
    %c0_167 = arith.constant 0 : index
    %c0_168 = arith.constant 0 : index
    %c147_169 = arith.constant 147 : index
    %156 = vector.load %arg7[%c0_167, %c0_168, %c147_169] : memref<1x12x512xbf16, #tpu.memory_space<vmem>>, vector<1x8x324xbf16>
    %157 = vector.shape_cast %156 : vector<1x8x324xbf16> to vector<8x324xbf16>
    %cst_170 = arith.constant dense<0.000000e+00> : vector<4x324xf32>
    %158 = tpu.matmul %155, %157, %cst_170 {dimension_numbers = #tpu.dot_dimension_numbers<[1], [0], [0], [1], [0, 0, 1, 1], [], []>} : vector<4x8xbf16>, vector<8x324xbf16>, vector<4x324xf32> -> vector<4x324xf32>
    %159 = arith.addf %153, %158 : vector<4x324xf32>
    %c0_171 = arith.constant 0 : index
    %c8_172 = arith.constant 8 : index
    %c0_173 = arith.constant 0 : index
    %160 = vector.load %arg6[%c0_171, %c8_172, %c0_173] : memref<1x16x324xf32, #tpu.memory_space<vmem>>, vector<1x4x324xf32>
    %161 = vector.shape_cast %160 : vector<1x4x324xf32> to vector<4x324xf32>
    %162 = vector.shape_cast %159 : vector<4x324xf32> to vector<1x4x324xf32>
    tpu.vector_store %arg6[%c0_171, %c8_172, %c0_173], %162 {strides = array<i32>} : memref<1x16x324xf32, #tpu.memory_space<vmem>>, vector<1x4x324xf32>,
    %c0_174 = arith.constant 0 : index
    %c0_175 = arith.constant 0 : index
    %c0_176 = arith.constant 0 : index
    %163 = vector.load %arg6[%c0_174, %c0_175, %c0_176] : memref<1x16x324xf32, #tpu.memory_space<vmem>>, vector<1x12x324xf32>
    %164 = vector.shape_cast %163 : vector<1x12x324xf32> to vector<12x324xf32>
    %c2_177 = arith.constant 2 : index
    %c0_178 = arith.constant 0 : index
    %c0_179 = arith.constant 0 : index
    %165 = vector.load %arg3[%c2_177, %c0_178, %c0_179] : memref<3x12x1xf32, #tpu.memory_space<vmem>>, vector<1x12x1xf32>
    %166 = vector.shape_cast %165 : vector<1x12x1xf32> to vector<12x1xf32>
    %167 = vector.broadcast %166 : vector<12x1xf32> to vector<12x324xf32>
    %168 = arith.mulf %164, %167 : vector<12x324xf32>
    %c2_180 = arith.constant 2 : index
    %c0_181 = arith.constant 0 : index
    %c0_182 = arith.constant 0 : index
    %169 = vector.load %arg4[%c2_180, %c0_181, %c0_182] : memref<3x12x1xf32, #tpu.memory_space<vmem>>, vector<1x12x1xf32>
    %170 = vector.shape_cast %169 : vector<1x12x1xf32> to vector<12x1xf32>
    %171 = vector.broadcast %170 : vector<12x1xf32> to vector<12x324xf32>
    %172 = arith.addf %168, %171 : vector<12x324xf32>
    %cst_183 = arith.constant 0.000000e+00 : f32
    %173 = vector.broadcast %cst_183 : f32 to vector<12x324xf32>
    %174 = arith.maximumf %172, %173 : vector<12x324xf32>
    %cst_184 = arith.constant 0.000000e+00 : f32
    %175 = vector.shape_cast %4 : vector<1x324xi1> to vector<1x324xi1>
    %176 = vector.broadcast %175 : vector<1x324xi1> to vector<12x324xi1>
    %177 = vector.broadcast %cst_184 : f32 to vector<12x324xf32>
    %178 = arith.select %176, %174, %177 : vector<12x324xi1>, vector<12x324xf32>
    %179 = arith.truncf %178 : vector<12x324xf32> to vector<12x324xbf16>
    %c0_185 = arith.constant 0 : index
    %c0_186 = arith.constant 0 : index
    %c128_187 = arith.constant 128 : index
    %180 = vector.load %arg7[%c0_185, %c0_186, %c128_187] : memref<1x12x512xbf16, #tpu.memory_space<vmem>>, vector<1x12x324xbf16>
    %181 = vector.shape_cast %180 : vector<1x12x324xbf16> to vector<12x324xbf16>
    %182 = vector.shape_cast %179 : vector<12x324xbf16> to vector<1x12x324xbf16>
    tpu.vector_store %arg7[%c0_185, %c0_186, %c128_187], %182 {strides = array<i32>} : memref<1x12x512xbf16, #tpu.memory_space<vmem>>, vector<1x12x324xbf16>,
    %cst_188 = arith.constant 0.000000e+00 : f32
    %183 = vector.broadcast %cst_188 : f32 to vector<4x324xf32>
    %c2_189 = arith.constant 2 : index
    %c0_190 = arith.constant 0 : index
    %c0_191 = arith.constant 0 : index
    %c0_192 = arith.constant 0 : index
    %184 = vector.load %arg5[%c2_189, %c0_190, %c0_191, %c0_192] : memref<3x9x4x12xbf16, #tpu.memory_space<vmem>>, vector<1x1x4x12xbf16>
    %185 = vector.shape_cast %184 : vector<1x1x4x12xbf16> to vector<4x12xbf16>
    %c0_193 = arith.constant 0 : index
    %c0_194 = arith.constant 0 : index
    %c109_195 = arith.constant 109 : index
    %186 = vector.load %arg7[%c0_193, %c0_194, %c109_195] : memref<1x12x512xbf16, #tpu.memory_space<vmem>>, vector<1x12x324xbf16>
    %187 = vector.shape_cast %186 : vector<1x12x324xbf16> to vector<12x324xbf16>
    %cst_196 = arith.constant dense<0.000000e+00> : vector<4x324xf32>
    %188 = tpu.matmul %185, %187, %cst_196 {dimension_numbers = #tpu.dot_dimension_numbers<[1], [0], [0], [1], [0, 0, 1, 1], [], []>} : vector<4x12xbf16>, vector<12x324xbf16>, vector<4x324xf32> -> vector<4x324xf32>
    %189 = arith.addf %183, %188 : vector<4x324xf32>
    %c2_197 = arith.constant 2 : index
    %c1_198 = arith.constant 1 : index
    %c0_199 = arith.constant 0 : index
    %c0_200 = arith.constant 0 : index
    %190 = vector.load %arg5[%c2_197, %c1_198, %c0_199, %c0_200] : memref<3x9x4x12xbf16, #tpu.memory_space<vmem>>, vector<1x1x4x12xbf16>
    %191 = vector.shape_cast %190 : vector<1x1x4x12xbf16> to vector<4x12xbf16>
    %c0_201 = arith.constant 0 : index
    %c0_202 = arith.constant 0 : index
    %c110_203 = arith.constant 110 : index
    %192 = vector.load %arg7[%c0_201, %c0_202, %c110_203] : memref<1x12x512xbf16, #tpu.memory_space<vmem>>, vector<1x12x324xbf16>
    %193 = vector.shape_cast %192 : vector<1x12x324xbf16> to vector<12x324xbf16>
    %cst_204 = arith.constant dense<0.000000e+00> : vector<4x324xf32>
    %194 = tpu.matmul %191, %193, %cst_204 {dimension_numbers = #tpu.dot_dimension_numbers<[1], [0], [0], [1], [0, 0, 1, 1], [], []>} : vector<4x12xbf16>, vector<12x324xbf16>, vector<4x324xf32> -> vector<4x324xf32>
    %195 = arith.addf %189, %194 : vector<4x324xf32>
    %c2_205 = arith.constant 2 : index
    %c2_206 = arith.constant 2 : index
    %c0_207 = arith.constant 0 : index
    %c0_208 = arith.constant 0 : index
    %196 = vector.load %arg5[%c2_205, %c2_206, %c0_207, %c0_208] : memref<3x9x4x12xbf16, #tpu.memory_space<vmem>>, vector<1x1x4x12xbf16>
    %197 = vector.shape_cast %196 : vector<1x1x4x12xbf16> to vector<4x12xbf16>
    %c0_209 = arith.constant 0 : index
    %c0_210 = arith.constant 0 : index
    %c111_211 = arith.constant 111 : index
    %198 = vector.load %arg7[%c0_209, %c0_210, %c111_211] : memref<1x12x512xbf16, #tpu.memory_space<vmem>>, vector<1x12x324xbf16>
    %199 = vector.shape_cast %198 : vector<1x12x324xbf16> to vector<12x324xbf16>
    %cst_212 = arith.constant dense<0.000000e+00> : vector<4x324xf32>
    %200 = tpu.matmul %197, %199, %cst_212 {dimension_numbers = #tpu.dot_dimension_numbers<[1], [0], [0], [1], [0, 0, 1, 1], [], []>} : vector<4x12xbf16>, vector<12x324xbf16>, vector<4x324xf32> -> vector<4x324xf32>
    %201 = arith.addf %195, %200 : vector<4x324xf32>
    %c2_213 = arith.constant 2 : index
    %c3_214 = arith.constant 3 : index
    %c0_215 = arith.constant 0 : index
    %c0_216 = arith.constant 0 : index
    %202 = vector.load %arg5[%c2_213, %c3_214, %c0_215, %c0_216] : memref<3x9x4x12xbf16, #tpu.memory_space<vmem>>, vector<1x1x4x12xbf16>
    %203 = vector.shape_cast %202 : vector<1x1x4x12xbf16> to vector<4x12xbf16>
    %c0_217 = arith.constant 0 : index
    %c0_218 = arith.constant 0 : index
    %c127_219 = arith.constant 127 : index
    %204 = vector.load %arg7[%c0_217, %c0_218, %c127_219] : memref<1x12x512xbf16, #tpu.memory_space<vmem>>, vector<1x12x324xbf16>
    %205 = vector.shape_cast %204 : vector<1x12x324xbf16> to vector<12x324xbf16>
    %cst_220 = arith.constant dense<0.000000e+00> : vector<4x324xf32>
    %206 = tpu.matmul %203, %205, %cst_220 {dimension_numbers = #tpu.dot_dimension_numbers<[1], [0], [0], [1], [0, 0, 1, 1], [], []>} : vector<4x12xbf16>, vector<12x324xbf16>, vector<4x324xf32> -> vector<4x324xf32>
    %207 = arith.addf %201, %206 : vector<4x324xf32>
    %c2_221 = arith.constant 2 : index
    %c4_222 = arith.constant 4 : index
    %c0_223 = arith.constant 0 : index
    %c0_224 = arith.constant 0 : index
    %208 = vector.load %arg5[%c2_221, %c4_222, %c0_223, %c0_224] : memref<3x9x4x12xbf16, #tpu.memory_space<vmem>>, vector<1x1x4x12xbf16>
    %209 = vector.shape_cast %208 : vector<1x1x4x12xbf16> to vector<4x12xbf16>
    %c0_225 = arith.constant 0 : index
    %c0_226 = arith.constant 0 : index
    %c128_227 = arith.constant 128 : index
    %210 = vector.load %arg7[%c0_225, %c0_226, %c128_227] : memref<1x12x512xbf16, #tpu.memory_space<vmem>>, vector<1x12x324xbf16>
    %211 = vector.shape_cast %210 : vector<1x12x324xbf16> to vector<12x324xbf16>
    %cst_228 = arith.constant dense<0.000000e+00> : vector<4x324xf32>
    %212 = tpu.matmul %209, %211, %cst_228 {dimension_numbers = #tpu.dot_dimension_numbers<[1], [0], [0], [1], [0, 0, 1, 1], [], []>} : vector<4x12xbf16>, vector<12x324xbf16>, vector<4x324xf32> -> vector<4x324xf32>
    %213 = arith.addf %207, %212 : vector<4x324xf32>
    %c2_229 = arith.constant 2 : index
    %c5_230 = arith.constant 5 : index
    %c0_231 = arith.constant 0 : index
    %c0_232 = arith.constant 0 : index
    %214 = vector.load %arg5[%c2_229, %c5_230, %c0_231, %c0_232] : memref<3x9x4x12xbf16, #tpu.memory_space<vmem>>, vector<1x1x4x12xbf16>
    %215 = vector.shape_cast %214 : vector<1x1x4x12xbf16> to vector<4x12xbf16>
    %c0_233 = arith.constant 0 : index
    %c0_234 = arith.constant 0 : index
    %c129_235 = arith.constant 129 : index
    %216 = vector.load %arg7[%c0_233, %c0_234, %c129_235] : memref<1x12x512xbf16, #tpu.memory_space<vmem>>, vector<1x12x324xbf16>
    %217 = vector.shape_cast %216 : vector<1x12x324xbf16> to vector<12x324xbf16>
    %cst_236 = arith.constant dense<0.000000e+00> : vector<4x324xf32>
    %218 = tpu.matmul %215, %217, %cst_236 {dimension_numbers = #tpu.dot_dimension_numbers<[1], [0], [0], [1], [0, 0, 1, 1], [], []>} : vector<4x12xbf16>, vector<12x324xbf16>, vector<4x324xf32> -> vector<4x324xf32>
    %219 = arith.addf %213, %218 : vector<4x324xf32>
    %c2_237 = arith.constant 2 : index
    %c6_238 = arith.constant 6 : index
    %c0_239 = arith.constant 0 : index
    %c0_240 = arith.constant 0 : index
    %220 = vector.load %arg5[%c2_237, %c6_238, %c0_239, %c0_240] : memref<3x9x4x12xbf16, #tpu.memory_space<vmem>>, vector<1x1x4x12xbf16>
    %221 = vector.shape_cast %220 : vector<1x1x4x12xbf16> to vector<4x12xbf16>
    %c0_241 = arith.constant 0 : index
    %c0_242 = arith.constant 0 : index
    %c145_243 = arith.constant 145 : index
    %222 = vector.load %arg7[%c0_241, %c0_242, %c145_243] : memref<1x12x512xbf16, #tpu.memory_space<vmem>>, vector<1x12x324xbf16>
    %223 = vector.shape_cast %222 : vector<1x12x324xbf16> to vector<12x324xbf16>
    %cst_244 = arith.constant dense<0.000000e+00> : vector<4x324xf32>
    %224 = tpu.matmul %221, %223, %cst_244 {dimension_numbers = #tpu.dot_dimension_numbers<[1], [0], [0], [1], [0, 0, 1, 1], [], []>} : vector<4x12xbf16>, vector<12x324xbf16>, vector<4x324xf32> -> vector<4x324xf32>
    %225 = arith.addf %219, %224 : vector<4x324xf32>
    %c2_245 = arith.constant 2 : index
    %c7_246 = arith.constant 7 : index
    %c0_247 = arith.constant 0 : index
    %c0_248 = arith.constant 0 : index
    %226 = vector.load %arg5[%c2_245, %c7_246, %c0_247, %c0_248] : memref<3x9x4x12xbf16, #tpu.memory_space<vmem>>, vector<1x1x4x12xbf16>
    %227 = vector.shape_cast %226 : vector<1x1x4x12xbf16> to vector<4x12xbf16>
    %c0_249 = arith.constant 0 : index
    %c0_250 = arith.constant 0 : index
    %c146_251 = arith.constant 146 : index
    %228 = vector.load %arg7[%c0_249, %c0_250, %c146_251] : memref<1x12x512xbf16, #tpu.memory_space<vmem>>, vector<1x12x324xbf16>
    %229 = vector.shape_cast %228 : vector<1x12x324xbf16> to vector<12x324xbf16>
    %cst_252 = arith.constant dense<0.000000e+00> : vector<4x324xf32>
    %230 = tpu.matmul %227, %229, %cst_252 {dimension_numbers = #tpu.dot_dimension_numbers<[1], [0], [0], [1], [0, 0, 1, 1], [], []>} : vector<4x12xbf16>, vector<12x324xbf16>, vector<4x324xf32> -> vector<4x324xf32>
    %231 = arith.addf %225, %230 : vector<4x324xf32>
    %c2_253 = arith.constant 2 : index
    %c8_254 = arith.constant 8 : index
    %c0_255 = arith.constant 0 : index
    %c0_256 = arith.constant 0 : index
    %232 = vector.load %arg5[%c2_253, %c8_254, %c0_255, %c0_256] : memref<3x9x4x12xbf16, #tpu.memory_space<vmem>>, vector<1x1x4x12xbf16>
    %233 = vector.shape_cast %232 : vector<1x1x4x12xbf16> to vector<4x12xbf16>
    %c0_257 = arith.constant 0 : index
    %c0_258 = arith.constant 0 : index
    %c147_259 = arith.constant 147 : index
    %234 = vector.load %arg7[%c0_257, %c0_258, %c147_259] : memref<1x12x512xbf16, #tpu.memory_space<vmem>>, vector<1x12x324xbf16>
    %235 = vector.shape_cast %234 : vector<1x12x324xbf16> to vector<12x324xbf16>
    %cst_260 = arith.constant dense<0.000000e+00> : vector<4x324xf32>
    %236 = tpu.matmul %233, %235, %cst_260 {dimension_numbers = #tpu.dot_dimension_numbers<[1], [0], [0], [1], [0, 0, 1, 1], [], []>} : vector<4x12xbf16>, vector<12x324xbf16>, vector<4x324xf32> -> vector<4x324xf32>
    %237 = arith.addf %231, %236 : vector<4x324xf32>
    %c0_261 = arith.constant 0 : index
    %c12 = arith.constant 12 : index
    %c0_262 = arith.constant 0 : index
    %238 = vector.load %arg6[%c0_261, %c12, %c0_262] : memref<1x16x324xf32, #tpu.memory_space<vmem>>, vector<1x4x324xf32>
    %239 = vector.shape_cast %238 : vector<1x4x324xf32> to vector<4x324xf32>
    %240 = vector.shape_cast %237 : vector<4x324xf32> to vector<1x4x324xf32>
    tpu.vector_store %arg6[%c0_261, %c12, %c0_262], %240 {strides = array<i32>} : memref<1x16x324xf32, #tpu.memory_space<vmem>>, vector<1x4x324xf32>,
    return
  }
  func.func @transform_0(%arg0: i32) -> (i32, i32, i32) {
    %c0_i32 = arith.constant 0 : i32
    %c0_i32_0 = arith.constant 0 : i32
    %c0_i32_1 = arith.constant 0 : i32
    return %arg0, %c0_i32, %c0_i32_0 : i32, i32, i32
  }
  func.func @transform_1(%arg0: i32) -> (i32, i32) {
    %c0_i32 = arith.constant 0 : i32
    %c0_i32_0 = arith.constant 0 : i32
    %c0_i32_1 = arith.constant 0 : i32
    return %c0_i32, %c0_i32_0 : i32, i32
  }
  func.func @transform_2(%arg0: i32) -> (i32, i32, i32) {
    %c0_i32 = arith.constant 0 : i32
    %c0_i32_0 = arith.constant 0 : i32
    %c0_i32_1 = arith.constant 0 : i32
    %c0_i32_2 = arith.constant 0 : i32
    return %c0_i32, %c0_i32_0, %c0_i32_1 : i32, i32, i32
  }
  func.func @transform_3(%arg0: i32) -> (i32, i32, i32) {
    %c0_i32 = arith.constant 0 : i32
    %c0_i32_0 = arith.constant 0 : i32
    %c0_i32_1 = arith.constant 0 : i32
    %c0_i32_2 = arith.constant 0 : i32
    return %c0_i32, %c0_i32_0, %c0_i32_1 : i32, i32, i32
  }
  func.func @transform_4(%arg0: i32) -> (i32, i32, i32, i32) {
    %c0_i32 = arith.constant 0 : i32
    %c0_i32_0 = arith.constant 0 : i32
    %c0_i32_1 = arith.constant 0 : i32
    %c0_i32_2 = arith.constant 0 : i32
    %c0_i32_3 = arith.constant 0 : i32
    return %c0_i32, %c0_i32_0, %c0_i32_1, %c0_i32_2 : i32, i32, i32, i32
  }
  func.func @transform_5(%arg0: i32) -> (i32, i32, i32) {
    %c0_i32 = arith.constant 0 : i32
    %c0_i32_0 = arith.constant 0 : i32
    %c0_i32_1 = arith.constant 0 : i32
    return %arg0, %c0_i32, %c0_i32_0 : i32, i32, i32
  }
}

</mosaic_0001>

<bundles_post_ra>
// kernel: dense_block_forward.1
= control target key start
LH: loop header
LB: loop body
LE: loop exit
PB: predicated region body
PF: predicated region fallthrough
CT: control target
= control target key end

     0   :  { %s4118_s18 = smov 0   ;;  %s4781_s0 = inlined_call_operand.vmem [shape: f32[2,4,324], index: 0, kind: input, shape index: {}]   ;;  %s4782_s1 = inlined_call_operand.vmem [shape: f32[1,324], index: 1, kind: input, shape index: {}]   ;;  %s4783_s2 = inlined_call_operand.vmem [shape: f32[3,12,1], index: 2, kind: input, shape index: {}]   ;;  %s4784_s3 = inlined_call_operand.vmem [shape: f32[3,12,1], index: 3, kind: input, shape index: {}]   ;;  %s4785_s4 = inlined_call_operand.vmem [shape: bf16[3,9,4,12], index: 4, kind: input, shape index: {}]   ;;  %s4786_s5 = inlined_call_operand.vmem [shape: f32[2,16,324], index: 5, kind: output, shape index: {}]  }
   0x1 LB: > { %s3457_s19 = sadd.s32 4294967295, %s4075_s18   ;;  %p3461_p0 = scmp.ge.s32.totalorder %s4075_s18, 1  ;;  %s4075_s18 = sphi %s4118_s18, %s15_s18  }
   0x2   : > { %p187_p1 = scmp.lt.s32.totalorder %s4075_s18, 3 }
   0x4   : > { %p188_p2 = pnand %p3461_p0, %p187_p1 }
   0x5   : > { %v244_v0 = vld [vmem:[%s4783_s2] sm:$0xf] (!%p188_p2)  ;;  %v4077_v1 = vmov (!%p188_p2), 0   ;;  %p215_p3 = scmp.lt.s32.totalorder (!%p188_p2), %s3457_s19, 1  ;;  %vm239_vm0 = vcmask (!%p188_p2), 551936   ;;  %v266_v6 = vlaneseq (!%p188_p2)  ;;  %vm298_vm5 = vcmask (!%p188_p2), 549888  }
   0x6   : > { %191 = sbr.rel (%p188_p2) target bundleno = 1511 (0x5e7), region = 40  ;;  %4045 = vset.pattern.permute.xlu0 (!%p188_p2), %v4077_v1  ;;  %226 = vst [vmem:[#allocation2] sm:$0xff] (!%p188_p2), %v4077_v1  ;;  %227 = vst [vmem:[#allocation2 + $0x8] sm:$0xff] (!%p188_p2), %v4077_v1  ;;  %373 = vmatprep.mubr.bf16.mxu0 (!%p188_p2), %v4077_v1  ;;  %v253_v2 = vld [vmem:[%s4784_s3] sm:$0xf] (!%p188_p2)  ;;  %v4078_v37 = vmov (!%p188_p2), 0.0  }
   0x7   : > { %228 = vst [vmem:[#allocation2 + $0x10] sm:$0x33] (!%p188_p2), %v4077_v1  ;;  %229 = vst [vmem:[#allocation2 + $0x18] sm:$0x33] (!%p188_p2), %v4077_v1  ;;  %247 = vperm.xlu0 (!%p188_p2), %4045, %v244_v0   ;;  %4046 = vset.pattern.permute.xlu1 (!%p188_p2), %v4077_v1  ;;  %v230_v7 = vld [vmem:[%s4782_s1] sm:$0x7] (!%p188_p2) }
   0x8   : > { %v267_v8 = vshrl.u32 (!%p188_p2), %v266_v6, 7  ;;  %vm231_vm1 = vcmp.gt.f32.partialorder (!%p188_p2), %v230_v7, 0.5  ;;  %3670 = vmatprep.subr.bf16.mxu1 (!%p188_p2), %v4078_v37  ;;  %s4079_s9 = smov (!%p188_p2), 18   ;;  %vm4080_vm6 = vmmov (!%p188_p2), 0   ;;  %s4081_s10 = smov (!%p188_p2), 19   ;;  %v3508_v46 = vld [vmem:[%s4783_s2 + $0x10] sm:$0xff] (!%p188_p2) }
   0x9   : > { %v265_v12 = vsel (!%p188_p2), %vm231_vm1, 1, %v4077_v1  ;;  %3672 = vmatprep.mubr.msk.bf16.mxu1 (!%p188_p2), %vm4080_vm6, %v4078_v37  ;;  %s4082_s11 = smov (!%p188_p2), 17   ;;  %s4083_s12 = smov (!%p188_p2), 1   ;;  %v3509_v47 = vld [vmem:[%s4784_s3 + $0x10] sm:$0xff] (!%p188_p2)  ;;  %vm323_vm7 = vcmask (!%p188_p2), 146432   ;;  %vm331_vm8 = vcmask (!%p188_p2), 1041408  }
   0xa   : > { %v268_v9 = vsub.s32 (!%p188_p2), 0, %v267_v8  ;;  %v272_v10 = vsub.s32 (!%p188_p2), 1, %v267_v8  ;;  %v276_v11 = vsub.s32 (!%p188_p2), 2, %v267_v8  ;;  %s4084_s13 = smov (!%p188_p2), 127   ;;  %s4085_s14 = smov (!%p188_p2), 111   ;;  %vm327_vm9 = vcmask (!%p188_p2), 31744  }
   0xb   : > { %256 = vperm.xlu0 (!%p188_p2), %4045, %v253_v2   ;;  %s4086_s15 = smov (!%p188_p2), 110   ;;  %s4087_s16 = smov (!%p188_p2), 109   ;;  %v3466_v55 = vld [vmem:[%s4785_s4 + $0x2] sm:$0x3] (!%p188_p2)  ;;  %vm430_vm10 = vcmask (!%p188_p2), 154624   ;;  %vm537_vm11 = vcmask (!%p188_p2), 138240  }
   0xc   : > { %v4158_v17 = vrot.slane (!%p188_p2), %v265_v12, %v268_v9  ;;  %v4160_v18 = vrot.slane (!%p188_p2), %v265_v12, %v272_v10  ;;  %v4162_v19 = vrot.slane (!%p188_p2), %v265_v12, %v276_v11  ;;  %v300_v6 = vld [vmem:[%s4785_s4] sm:$0x3] (!%p188_p2)  ;;  %vm647_vm12 = vcmask (!%p188_p2), 7168  }
   0xd   : > { %s4790_s19 = smov (!%p215_p3, %s3457_s19), 1  ;;  %vm863_vm13 = vcmask 1039360   ;;  %vm970_vm14 = vcmask 908288   ;;  %vm1077_vm15 = vcmask 900096   ;;  %vm1184_vm1 = vcmask 891904  }
   0xe   : > { %s4024_s24 = smul.u32 12, %s4790_s19  ;;  %vm278_vm2 = vcmp.eq.s32.totalorder %v4158_v17, 1  ;;  %vm279_vm3 = vcmp.eq.s32.totalorder %v4160_v18, 1  ;;  %vm280_vm4 = vcmp.eq.s32.totalorder %v4162_v19, 1 }
   0xf   : > { %s4025_s25 = smul.u32 48, %s4790_s19 }
  0x10   : > { %s219_s28 = scalar_lea.vmem %s4781_s0, %s4024_s24 }
  0x11   : > { %s4145_s6 = scalar_lea.vmem %s4786_s5, %s4025_s25  ;;  %v232_v3 = vld [vmem:[%s219_s28] sm:$0xff]  ;;  %v233_v4 = vld [vmem:[%s219_s28 + $0x8] sm:$0xf] }
  0x12   : > { %v235_v5 = vcombine.high %v232_v3, %v232_v3  ;;  %237 = vst [vmem:[%s4145_s6] sm:$0xf] %v232_v3  ;;  %240 = vst.msk [vmem:[%s4145_s6 + $0x10] sm:$0xf] %vm239_vm0, %v233_v4 }
  0x14   : > { %238 = vst [vmem:[%s4145_s6 + $0x8] sm:$0xf] %v235_v5 }
  0x19   : > { %v241_v14 = vld [vmem:[%s4145_s6] sm:$0xf]  ;;  %v243_v16 = vld [vmem:[%s4145_s6 + $0x10] sm:$0xf] }
  0x1b   : > { %v242_v15 = vld [vmem:[%s4145_s6 + $0x8] sm:$0xf] }
  0x86   : > { %v248_v13 = vpop.permute.xlu0 %247 }
  0x87   : > { %v250_v20 = vmul.f32 %v248_v13, %v241_v14  ;;  %v251_v21 = vmul.f32 %v248_v13, %v242_v15  ;;  %v252_v22 = vmul.f32 %v248_v13, %v243_v16 }
  0x8a   : > { %v257_v23 = vpop.permute.xlu0 %256 }
  0x8b   : > { %v259_v24 = vadd.f32 %v257_v23, %v250_v20  ;;  %v260_v25 = vadd.f32 %v257_v23, %v251_v21  ;;  %v261_v26 = vadd.f32 %v257_v23, %v252_v22  ;;  %v3477_v22 = vld [vmem:[%s4785_s4 + $0x4] sm:$0x3] }
  0x8d   : > { %v262_v27 = vmax.f32 %v259_v24, 0.0  ;;  %v263_v28 = vmax.f32 %v260_v25, 0.0  ;;  %v264_v29 = vmax.f32 %v261_v26, 0.0 }
  0x8f   : > { %v281_v30 = vsel %vm278_vm2, %v262_v27, 0.0  ;;  %v282_v31 = vsel %vm279_vm3, %v263_v28, 0.0  ;;  %v283_v32 = vsel %vm280_vm4, %v264_v29, 0.0  ;;  %v3481_v28 = vld [vmem:[%s4785_s4 + $0x6] sm:$0x3] }
  0x90   : > { %v3608_v33 = vpack.c.bf16 %v282_v31, %v281_v30  ;;  %v3609_v34 = vpack.c.bf16 %v283_v32, %v283_v32 }
  0x92   : > { %297 = vst [vmem:[#allocation2 + $0x4] sm:$0x33] %v3608_v33  ;;  %299 = vst.msk [vmem:[#allocation2 + $0xc] sm:$0x3] %vm298_vm5, %v3609_v34 }
  0x99   : > { %v302_v35 = vld [vmem:[#allocation2 + $0x8] sm:$0x33]  ;;  %v301_v36 = vld [vmem:[#allocation2] sm:$0x33] }
  0x9a   : > { %v3469_v38 = vcombine.low %v302_v35, %v302_v35  ;;  %v3467_v39 = vcombine.low %v301_v36, %v301_v36  ;;  %v3468_v40 = vcombine.high %v301_v36, %v301_v36  ;;  %v3470_v41 = vcombine.high %v302_v35, %v302_v35  ;;  %v749_v42 = vld [vmem:[#allocation2 + $0x4] sm:$0x33]  ;;  %v4196_v44 = vld [vmem:[#allocation2 + $0xc] ss:$0 sps:$4 sm:$0x33]  }
  0x9b   : > { %v4191_v43 = vcombine.low %v749_v42, %v749_v42  ;;  %v4201_v45 = vcombine.high %v749_v42, %v749_v42  ;;  %v769_v34 = vsel %vm331_vm8, %v4196_v44, 0  ;;  %v3485_v36 = vld [vmem:[%s4785_s4 + $0x8] sm:$0x3] }
  0x9c   : > { %319 = vrot.lane.b32.xlu0 %v3469_v38, %s4079_s9  ;;  %315 = vrot.lane.b32.xlu1 %v3467_v39, %s4079_s9 }
  0x9d   : > { %v763_v31 = vsel %vm331_vm8, %v4191_v43, 0 }
  0xa0   : > { %422 = vrot.lane.b32.xlu0 %v3467_v39, %s4081_s10  ;;  %317 = vrot.lane.b32.xlu1 %v3468_v40, %s4079_s9 }
  0xa4   : > { %426 = vrot.lane.b32.xlu0 %v3469_v38, %s4081_s10  ;;  %321 = vrot.lane.b32.xlu1 %v3470_v41, %s4079_s9 }
  0xa8   : > { %529 = vrot.lane.b32.xlu0 %v3467_v39, %s4082_s11  ;;  %424 = vrot.lane.b32.xlu1 %v3468_v40, %s4081_s10 }
  0xac   : > { %533 = vrot.lane.b32.xlu0 %v3469_v38, %s4082_s11  ;;  %428 = vrot.lane.b32.xlu1 %v3470_v41, %s4081_s10 }
  0xb0   : > { %639 = vrot.lane.b32.xlu0 %v3467_v39, %s4083_s12  ;;  %531 = vrot.lane.b32.xlu1 %v3468_v40, %s4082_s11 }
  0xb4   : > { %643 = vrot.lane.b32.xlu0 %v3469_v38, %s4083_s12  ;;  %535 = vrot.lane.b32.xlu1 %v3470_v41, %s4082_s11 }
  0xb8   : > { %857 = vrot.lane.b32.xlu0 %v4191_v43, %s4084_s13  ;;  %641 = vrot.lane.b32.xlu1 %v3468_v40, %s4083_s12 }
  0xbc   : > { %861 = vrot.lane.b32.xlu0 %v4196_v44, %s4084_s13  ;;  %645 = vrot.lane.b32.xlu1 %v3470_v41, %s4083_s12 }
  0xc0   : > { %966 = vrot.lane.b32.xlu0 %v4201_v45, %s4085_s14  ;;  %859 = vrot.lane.b32.xlu1 %v4201_v45, %s4084_s13 }
  0xc4   : > { %1071 = vrot.lane.b32.xlu0 %v4191_v43, %s4086_s15  ;;  %964 = vrot.lane.b32.xlu1 %v4191_v43, %s4085_s14 }
  0xc8   : > { %1075 = vrot.lane.b32.xlu0 %v4196_v44, %s4086_s15  ;;  %968 = vrot.lane.b32.xlu1 %v4196_v44, %s4085_s14 }
  0xcc   : > { %1180 = vrot.lane.b32.xlu0 %v4201_v45, %s4087_s16  ;;  %1073 = vrot.lane.b32.xlu1 %v4201_v45, %s4086_s15 }
  0xd0   : > { %1303 = vperm.xlu0 %4045, %v3508_v46   ;;  %1178 = vrot.lane.b32.xlu1 %v4191_v43, %s4087_s16 }
  0xd4   : > { %1182 = vrot.lane.b32.xlu1 %v4196_v44, %s4087_s16 }
  0xd8   : > { %1313 = vperm.xlu1 %4046, %v3509_v47  }
 0x10e   : > { %v320_v48 = vpop.permute.xlu0 %319  ;;  %v316_v49 = vpop.permute.xlu1 %315 }
 0x112   : > { %v423_v50 = vpop.permute.xlu0 %422  ;;  %v318_v51 = vpop.permute.xlu1 %317 }
 0x113   : > { %v325_v52 = vsel %vm323_vm7, %v318_v51, %v320_v48  ;;  %v324_v53 = vsel %vm323_vm7, %v316_v49, %v318_v51 }
 0x114   : > { %3471 = vmatprep.subr.msk.bf16.mxu0 %vm331_vm8, %v325_v52  ;;  %v333_v54 = vsel %vm331_vm8, %v324_v53, 0  ;;  %v3496_v53 = vld [vmem:[%s4785_s4 + $0xc] sm:$0x3] }
 0x115   : > { %342 = vmatpush1.bf16.msra.mxu0 %v333_v54 }
 0x116   : > { %v427_v56 = vpop.permute.xlu0 %426  ;;  %v322_v57 = vpop.permute.xlu1 %321 }
 0x117   : > { %v326_v58 = vsel %vm323_vm7, %v320_v48, %v322_v57 }
 0x118   : > { %3472 = vmatmul.mubr.msk.bf16.vlgmr.msra.gmra.mrb[0].mxu0 %vm327_vm9, %v3466_v55  ;;  %v339_v59 = vsel %vm331_vm8, %v326_v58, 0 }
 0x119   : > { %3671 = vmatpush3.bf16.msra.mxu1 %v339_v59  ;;  %478 = vmatprep.mubr.bf16.mxu0 %v4077_v1 }
 0x11a   : > { %v530_v60 = vpop.permute.xlu0 %529  ;;  %v425_v61 = vpop.permute.xlu1 %424  ;;  %3676 = vmatprep.subr.bf16.mxu1 %v4078_v37 }
 0x11b   : > { %v431_v62 = vsel %vm430_vm10, %v423_v50, %v425_v61  ;;  %v432_v63 = vsel %vm430_vm10, %v425_v61, %v427_v56 }
 0x11c   : > { %v438_v0 = vsel %vm331_vm8, %v431_v62, 0  ;;  %3673 = vmatmul.mubr.msk.bf16.vlgmr.msra.gmra.mrb[0].mxu1 %vm327_vm9, %v3466_v55  ;;  %3474 = vmatprep.subr.msk.bf16.mxu0 %vm331_vm8, %v432_v63  ;;  %v3504_v63 = vld [vmem:[%s4785_s4 + $0x10] sm:$0x3] }
 0x11d   : > { %447 = vmatpush1.bf16.msra.mxu0 %v438_v0  ;;  %3678 = vmatprep.mubr.msk.bf16.mxu1 %vm4080_vm6, %v4078_v37 }
 0x11e   : > { %v534_v2 = vpop.permute.xlu0 %533  ;;  %v429_v3 = vpop.permute.xlu1 %428 }
 0x11f   : > { %v433_v4 = vsel %vm430_vm10, %v427_v56, %v429_v3 }
 0x120   : > { %v444_v5 = vsel %vm331_vm8, %v433_v4, 0 }
 0x121   : > { %3677 = vmatpush3.bf16.msra.mxu1 %v444_v5 }
 0x122   : > { %v532_v7 = vpop.permute.xlu1 %531  ;;  %3682 = vmatprep.subr.bf16.mxu1 %v4078_v37  ;;  %v640_v10 = vpop.permute.xlu0 %639 }
 0x123   : > { %v538_v8 = vsel %vm537_vm11, %v530_v60, %v532_v7  ;;  %v539_v9 = vsel %vm537_vm11, %v532_v7, %v534_v2  ;;  %v3500_v60 = vld [vmem:[%s4785_s4 + $0xe] sm:$0x3] }
 0x124   : > { %v545_v11 = vsel %vm331_vm8, %v538_v8, 0  ;;  %3475 = vmatmul.mubr.msk.bf16.vlgmr.msra.gmra.mrb[0].mxu0 %vm327_vm9, %v300_v6  ;;  %3478 = vmatprep.subr.msk.bf16.mxu0 %vm331_vm8, %v539_v9 }
 0x125   : > { %554 = vmatpush1.bf16.msra.mxu0 %v545_v11  ;;  %585 = vmatprep.mubr.bf16.mxu0 %v4077_v1 }
 0x126   : > { %v536_v12 = vpop.permute.xlu1 %535  ;;  %v644_v15 = vpop.permute.xlu0 %643 }
 0x127   : > { %v540_v13 = vsel %vm537_vm11, %v534_v2, %v536_v12 }
 0x128   : > { %v551_v14 = vsel %vm331_vm8, %v540_v13, 0  ;;  %3679 = vmatmul.mubr.msk.bf16.vlgmr.msra.gmra.mrb[0].mxu1 %vm327_vm9, %v300_v6 }
 0x129   : > { %3683 = vmatpush3.bf16.msra.mxu1 %v551_v14  ;;  %3684 = vmatprep.mubr.msk.bf16.mxu1 %vm4080_vm6, %v4078_v37 }
 0x12a   : > { %v642_v16 = vpop.permute.xlu1 %641  ;;  %3688 = vmatprep.subr.bf16.mxu1 %v4078_v37  ;;  %v858_v27 = vpop.permute.xlu0 %857 }
 0x12b   : > { %v649_v20 = vsel %vm647_vm12, %v642_v16, %v644_v15  ;;  %v648_v21 = vsel %vm647_vm12, %v640_v10, %v642_v16 }
 0x12c   : > { %3482 = vmatprep.subr.msk.bf16.mxu0 %vm331_vm8, %v649_v20  ;;  %v655_v24 = vsel %vm331_vm8, %v648_v21, 0 }
 0x12e   : > { %v646_v23 = vpop.permute.xlu1 %645  ;;  %v862_v30 = vpop.permute.xlu0 %861 }
 0x12f   : > { %v650_v25 = vsel %vm647_vm12, %v644_v15, %v646_v23  ;;  %v876_v42 = vsel %vm331_vm8, %v862_v30, 0 }
 0x130   : > { %3479 = vmatmul.mubr.msk.bf16.vlgmr.msra.gmra.mrb[0].mxu0 %vm327_vm9, %v3477_v22  ;;  %v661_v26 = vsel %vm331_vm8, %v650_v25, 0 }
 0x131   : > { %664 = vmatpush1.bf16.msra.mxu0 %v655_v24  ;;  %695 = vmatprep.mubr.bf16.mxu0 %v4077_v1 }
 0x132   : > { %3489 = vmatprep.subr.msk.bf16.mxu0 %vm331_vm8, %v4201_v45  ;;  %v860_v29 = vpop.permute.xlu1 %859  ;;  %v967_v39 = vpop.permute.xlu0 %966  ;;  %v3492_v45 = vld [vmem:[%s4785_s4 + $0xa] sm:$0x3] }
 0x133   : > { %v865_v32 = vsel %vm863_vm13, %v860_v29, %v862_v30  ;;  %v864_v35 = vsel %vm863_vm13, %v858_v27, %v860_v29 }
 0x134   : > { %3685 = vmatmul.mubr.msk.bf16.vlgmr.msra.gmra.mrb[0].mxu1 %vm327_vm9, %v3477_v22  ;;  %v870_v40 = vsel %vm331_vm8, %v864_v35, 0 }
 0x135   : > { %3689 = vmatpush3.bf16.msra.mxu1 %v661_v26  ;;  %3690 = vmatprep.mubr.msk.bf16.mxu1 %vm4080_vm6, %v4078_v37 }
 0x136   : > { %3694 = vmatprep.subr.bf16.mxu1 %v4078_v37  ;;  %v965_v33 = vpop.permute.xlu1 %964  ;;  %v1072_v43 = vpop.permute.xlu0 %1071 }
 0x137   : > { %v971_v44 = vsel %vm970_vm14, %v965_v33, %v967_v39 }
 0x138   : > { %v977_v47 = vsel %vm331_vm8, %v971_v44, 0  ;;  %v3556_v44 = vld [vmem:[%s4783_s2 + $0x28] sm:$0xf] }
 0x13a   : > { %v969_v38 = vpop.permute.xlu1 %968  ;;  %v1076_v48 = vpop.permute.xlu0 %1075 }
 0x13b   : > { %v972_v41 = vsel %vm970_vm14, %v967_v39, %v969_v38  ;;  %v983_v50 = vsel %vm331_vm8, %v969_v38, 0  ;;  %v1090_v58 = vsel %vm331_vm8, %v1076_v48, 0 }
 0x13c   : > { %3483 = vmatmul.mubr.msk.bf16.vlgmr.msra.gmra.mrb[0].mxu0 %vm327_vm9, %v3481_v28 }
 0x13d   : > { %772 = vmatpush1.bf16.msra.mxu0 %v763_v31  ;;  %803 = vmatprep.mubr.bf16.mxu0 %v4077_v1 }
 0x13e   : > { %3493 = vmatprep.subr.msk.bf16.mxu0 %vm331_vm8, %v865_v32  ;;  %v1074_v46 = vpop.permute.xlu1 %1073  ;;  %v1181_v55 = vpop.permute.xlu0 %1180 }
 0x13f   : > { %v1079_v49 = vsel %vm1077_vm15, %v1074_v46, %v1076_v48  ;;  %v1078_v52 = vsel %vm1077_vm15, %v1072_v43, %v1074_v46  ;;  %v3558_v46 = vld [vmem:[%s4784_s3 + $0x28] sm:$0xf] }
 0x140   : > { %3691 = vmatmul.mubr.msk.bf16.vlgmr.msra.gmra.mrb[0].mxu1 %vm327_vm9, %v3481_v28  ;;  %v1084_v56 = vsel %vm331_vm8, %v1078_v52, 0 }
 0x141   : > { %3695 = vmatpush3.bf16.msra.mxu1 %v769_v34  ;;  %3696 = vmatprep.mubr.msk.bf16.mxu1 %vm4080_vm6, %v4078_v37 }
 0x142   : > { %3700 = vmatprep.subr.bf16.mxu1 %v4078_v37  ;;  %v1179_v51 = vpop.permute.xlu1 %1178 }
 0x143   : > { %v1185_v59 = vsel %vm1184_vm1, %v1179_v51, %v1181_v55 }
 0x144   : > { %v1191_v61 = vsel %vm331_vm8, %v1185_v59, 0 }
 0x146   : > { %v1183_v54 = vpop.permute.xlu1 %1182 }
 0x147   : > { %v1186_v57 = vsel %vm1184_vm1, %v1181_v55, %v1183_v54  ;;  %v1197_v62 = vsel %vm331_vm8, %v1183_v54, 0 }
 0x148   : > { %3490 = vmatmul.mubr.msk.bf16.vlgmr.msra.gmra.mrb[0].mxu0 %vm327_vm9, %v3485_v36 }
 0x149   : > { %879 = vmatpush1.bf16.msra.mxu0 %v870_v40  ;;  %910 = vmatprep.mubr.bf16.mxu0 %v4077_v1 }
 0x14a   : > { %3497 = vmatprep.subr.msk.bf16.mxu0 %vm331_vm8, %v972_v41 }
 0x14c   : > { %3697 = vmatmul.mubr.msk.bf16.vlgmr.msra.gmra.mrb[0].mxu1 %vm327_vm9, %v3485_v36 }
 0x14d   : > { %3701 = vmatpush3.bf16.msra.mxu1 %v876_v42  ;;  %3702 = vmatprep.mubr.msk.bf16.mxu1 %vm4080_vm6, %v4078_v37 }
 0x14e   : > { %3706 = vmatprep.subr.bf16.mxu1 %v4078_v37 }
 0x14f   : > { %v1304_v12 = vpop.permute.xlu0 %1303 }
 0x154   : > { %3494 = vmatmul.mubr.msk.bf16.vlgmr.msra.gmra.mrb[0].mxu0 %vm327_vm9, %v3492_v45 }
 0x155   : > { %986 = vmatpush1.bf16.msra.mxu0 %v977_v47  ;;  %1017 = vmatprep.mubr.bf16.mxu0 %v4077_v1  ;;  %v3557_v47 = vld [vmem:[%s4784_s3 + $0x20] sm:$0xff] }
 0x156   : > { %3501 = vmatprep.subr.msk.bf16.mxu0 %vm331_vm8, %v1079_v49 }
 0x157   : > { %v1314_v14 = vpop.permute.xlu1 %1313 }
 0x158   : > { %3703 = vmatmul.mubr.msk.bf16.vlgmr.msra.gmra.mrb[0].mxu1 %vm327_vm9, %v3492_v45  ;;  %v3555_v45 = vld [vmem:[%s4783_s2 + $0x20] sm:$0xff] }
 0x159   : > { %3707 = vmatpush3.bf16.msra.mxu1 %v983_v50  ;;  %3708 = vmatprep.mubr.msk.bf16.mxu1 %vm4080_vm6, %v4078_v37 }
 0x15a   : > { %3712 = vmatprep.subr.bf16.mxu1 %v4078_v37 }
 0x160   : > { %3498 = vmatmul.mubr.msk.bf16.vlgmr.msra.gmra.mrb[0].mxu0 %vm327_vm9, %v3496_v53 }
 0x161   : > { %1093 = vmatpush1.bf16.msra.mxu0 %v1084_v56  ;;  %1124 = vmatprep.mubr.bf16.mxu0 %v4077_v1 }
 0x162   : > { %3505 = vmatprep.subr.msk.bf16.mxu0 %vm331_vm8, %v1186_v57  ;;  %vm4787_vm8 = vcmask 556036   ;;  %v3513_v57 = vld [vmem:[%s4785_s4 + $0x14] sm:$0x3] }
 0x164   : > { %3709 = vmatmul.mubr.msk.bf16.vlgmr.msra.gmra.mrb[0].mxu1 %vm327_vm9, %v3496_v53 }
 0x165   : > { %3713 = vmatpush3.bf16.msra.mxu1 %v1090_v58  ;;  %3714 = vmatprep.mubr.msk.bf16.mxu1 %vm4080_vm6, %v4078_v37 }
 0x166   : > { %3718 = vmatprep.subr.bf16.mxu1 %v4078_v37 }
 0x16c   : > { %3502 = vmatmul.mubr.msk.bf16.vlgmr.msra.gmra.mrb[0].mxu0 %vm327_vm9, %v3500_v60 }
 0x16d   : > { %1200 = vmatpush1.bf16.msra.mxu0 %v1191_v61  ;;  %1231 = vmatprep.mubr.bf16.mxu0 %v4077_v1 }
 0x170   : > { %3715 = vmatmul.mubr.msk.bf16.vlgmr.msra.gmra.mrb[0].mxu1 %vm327_vm9, %v3500_v60 }
 0x171   : > { %3719 = vmatpush3.bf16.msra.mxu1 %v1197_v62  ;;  %3720 = vmatprep.mubr.msk.bf16.mxu1 %vm4080_vm6, %v4078_v37 }
 0x172   : > { %3724 = vmatprep.subr.bf16.mxu1 %v4078_v37 }
 0x178   : > { %3506 = vmatmul.mubr.msk.bf16.vlgmr.msra.gmra.mrb[0].mxu0 %vm327_vm9, %v3504_v63 }
 0x179   : > { %1413 = vmatprep.mubr.bf16.mxu0 %v4077_v1 }
 0x17c   : > { %3721 = vmatmul.mubr.msk.bf16.vlgmr.msra.gmra.mrb[0].mxu1 %vm327_vm9, %v3504_v63  ;;  %vm1371_vm9 = vcmask 1043456  }
 0x17d   : > { %3726 = vmatprep.mubr.msk.bf16.mxu1 %vm4080_vm6, %v4078_v37 }
 0x24b   : > { %v1233_v0 = vpop.f32.mrb[0].mxu0 }
 0x24c   : > { %v1286_v2 = vrot.slane %v1233_v0, 4  ;;  %v1235_v3 = vpop.f32.mrb[1].mxu0 }
 0x24d   : > { %v1287_v4 = vrot.slane %v1235_v3, 4  ;;  %v1237_v5 = vpop.f32.mrb[2].mxu0 }
 0x24e   : > { %1292 = vst [vmem:[%s4145_s6] sm:$0xf0] %v1286_v2  ;;  %v1238_v6 = vpop.f32.mrb[3].mxu0 }
 0x24f   : > { %1293 = vst [vmem:[%s4145_s6 + $0x8] sm:$0xf0] %v1287_v4  ;;  %v1274_v7 = vpop.f32.mrb[0].mxu1  ;;  %v3512_v6 = vld [vmem:[%s4785_s4 + $0x12] sm:$0x3] }
 0x250   : > { %v1288_v8 = vrot.slane %v1274_v7, 4  ;;  %v3722_v9 = vpop.f32.mrb[1].mxu1 }
 0x251   : > { %v1277_v10 = vpop.f32.mrb[2].mxu1 }
 0x252   : > { %1295 = vst.msk [vmem:[%s4145_s6 + $0x10] sm:$0xf0] %vm4787_vm8, %v1288_v8  ;;  %v3723_v11 = vpop.f32.mrb[3].mxu1  ;;  %vm1367_vm8 = vcmask 64512  }
 0x255   : > { %v4365_v13 = vld [vmem:[%s4145_s6] sm:$0xff] }
 0x256   : > { %v4368_v15 = vld [vmem:[%s4145_s6 + $0x8] sm:$0xff]  ;;  %v1306_v16 = vmul.f32 %v1304_v12, %v4365_v13 }
 0x257   : > { %v1307_v20 = vmul.f32 %v1304_v12, %v4368_v15 }
 0x258   : > { %v1316_v21 = vadd.f32 %v1314_v14, %v1306_v16 }
 0x259   : > { %v4373_v22 = vld [vmem:[%s4145_s6 + $0x10] sm:$0xff]  ;;  %v1317_v23 = vadd.f32 %v1314_v14, %v1307_v20 }
 0x25a   : > { %v1308_v24 = vmul.f32 %v1304_v12, %v4373_v22  ;;  %v1319_v25 = vmax.f32 %v1316_v21, 0.0 }
 0x25b   : > { %v1320_v26 = vmax.f32 %v1317_v23, 0.0 }
 0x25c   : > { %v1318_v27 = vadd.f32 %v1314_v14, %v1308_v24  ;;  %v1322_v28 = vsel %vm278_vm2, %v1319_v25, 0.0 }
 0x25d   : > { %v1323_v29 = vsel %vm279_vm3, %v1320_v26, 0.0  ;;  %v4401_v42 = vpack.c.bf16 %v1322_v28, %v1322_v28 }
 0x25e   : > { %v1321_v30 = vmax.f32 %v1318_v27, 0.0  ;;  %v3610_v31 = vpack.c.bf16 %v1323_v29, %v1322_v28  ;;  %v4399_v41 = vpack.c.bf16 %v1323_v29, %v1323_v29  ;;  %v3524_v27 = vld [vmem:[%s4785_s4 + $0x16] sm:$0x3] }
 0x260   : > { %v1324_v32 = vsel %vm280_vm4, %v1321_v30, 0.0  ;;  %1338 = vst [vmem:[#allocation2 + $0x4] sm:$0xff] %v3610_v31 }
 0x261   : > { %v3611_v33 = vpack.c.bf16 %v1324_v32, %v1324_v32  ;;  %v3528_v32 = vld [vmem:[%s4785_s4 + $0x18] sm:$0x3] }
 0x263   : > { %1339 = vst.msk [vmem:[#allocation2 + $0xc] sm:$0xf] %vm239_vm0, %v3611_v33 }
 0x267   : > { %v1342_v34 = vld [vmem:[#allocation2] sm:$0xff] }
 0x268   : > { %v3515_v35 = vcombine.high %v1342_v34, %v1342_v34  ;;  %v3514_v36 = vcombine.low %v1342_v34, %v1342_v34  ;;  %v1800_v34 = vsel %vm1371_vm9, %v4401_v42, 0 }
 0x26a   : > { %1358 = vrot.lane.b32.xlu1 %v3515_v35, %s4079_s9  ;;  %1356 = vrot.lane.b32.xlu0 %v3514_v36, %s4079_s9  ;;  %v1343_v38 = vld [vmem:[#allocation2 + $0x8] sm:$0xff] }
 0x26b   : > { %v3517_v39 = vcombine.high %v1343_v38, %v1343_v38  ;;  %v3516_v40 = vcombine.low %v1343_v38, %v1343_v38  ;;  %v4407_v43 = vld [vmem:[#allocation2 + $0xc] ss:$0 sps:$4 sm:$0xff]  }
 0x26e   : > { %1362 = vrot.lane.b32.xlu1 %v3517_v39, %s4079_s9  ;;  %1360 = vrot.lane.b32.xlu0 %v3516_v40, %s4079_s9 }
 0x272   : > { %1464 = vrot.lane.b32.xlu1 %v3515_v35, %s4081_s10  ;;  %1462 = vrot.lane.b32.xlu0 %v3514_v36, %s4081_s10 }
 0x276   : > { %1468 = vrot.lane.b32.xlu1 %v3517_v39, %s4081_s10  ;;  %1466 = vrot.lane.b32.xlu0 %v3516_v40, %s4081_s10 }
 0x27a   : > { %1570 = vrot.lane.b32.xlu1 %v3515_v35, %s4082_s11  ;;  %1568 = vrot.lane.b32.xlu0 %v3514_v36, %s4082_s11 }
 0x27e   : > { %1574 = vrot.lane.b32.xlu1 %v3517_v39, %s4082_s11  ;;  %1572 = vrot.lane.b32.xlu0 %v3516_v40, %s4082_s11 }
 0x282   : > { %1679 = vrot.lane.b32.xlu1 %v3515_v35, %s4083_s12  ;;  %1677 = vrot.lane.b32.xlu0 %v3514_v36, %s4083_s12  ;;  %v1806_v35 = vsel %vm1371_vm9, %v4407_v43, 0 }
 0x286   : > { %1683 = vrot.lane.b32.xlu1 %v3517_v39, %s4083_s12  ;;  %1681 = vrot.lane.b32.xlu0 %v3516_v40, %s4083_s12 }
 0x28a   : > { %1896 = vrot.lane.b32.xlu1 %v4399_v41, %s4084_s13  ;;  %1894 = vrot.lane.b32.xlu0 %v4401_v42, %s4084_s13 }
 0x28e   : > { %2000 = vrot.lane.b32.xlu1 %v4401_v42, %s4085_s14  ;;  %1898 = vrot.lane.b32.xlu0 %v4407_v43, %s4084_s13 }
 0x292   : > { %2004 = vrot.lane.b32.xlu1 %v4407_v43, %s4085_s14  ;;  %2002 = vrot.lane.b32.xlu0 %v4399_v41, %s4085_s14 }
 0x296   : > { %2108 = vrot.lane.b32.xlu1 %v4399_v41, %s4086_s15  ;;  %2106 = vrot.lane.b32.xlu0 %v4401_v42, %s4086_s15 }
 0x29a   : > { %2212 = vrot.lane.b32.xlu1 %v4401_v42, %s4087_s16  ;;  %2110 = vrot.lane.b32.xlu0 %v4407_v43, %s4086_s15  ;;  %v3532_v42 = vld [vmem:[%s4785_s4 + $0x1a] sm:$0x3] }
 0x29e   : > { %2216 = vrot.lane.b32.xlu1 %v4407_v43, %s4087_s16  ;;  %2214 = vrot.lane.b32.xlu0 %v4399_v41, %s4087_s16 }
 0x2a2   : > { %2335 = vperm.xlu1 %4046, %v3556_v44   ;;  %2330 = vperm.xlu0 %4045, %v3555_v45  }
 0x2a6   : > { %2354 = vperm.xlu1 %4046, %v3558_v46   ;;  %2349 = vperm.xlu0 %4045, %v3557_v47  }
 0x2dc   : > { %v1359_v48 = vpop.permute.xlu1 %1358  ;;  %v1357_v49 = vpop.permute.xlu0 %1356 }
 0x2dd   : > { %v1364_v50 = vsel %vm323_vm7, %v1357_v49, %v1359_v48 }
 0x2de   : > { %v1373_v55 = vsel %vm1371_vm9, %v1364_v50, 0  ;;  %v3539_v50 = vld [vmem:[%s4785_s4 + $0x1c] sm:$0x3] }
 0x2e0   : > { %v1363_v51 = vpop.permute.xlu1 %1362  ;;  %v1361_v52 = vpop.permute.xlu0 %1360 }
 0x2e1   : > { %v1365_v53 = vsel %vm323_vm7, %v1359_v48, %v1361_v52  ;;  %v1366_v54 = vsel %vm323_vm7, %v1361_v52, %v1363_v51 }
 0x2e2   : > { %v1379_v56 = vsel %vm1371_vm9, %v1366_v54, 0  ;;  %3518 = vmatprep.subr.msk.bf16.mxu0 %vm1371_vm9, %v1365_v53 }
 0x2e3   : > { %1382 = vmatpush1.bf16.msra.mxu0 %v1373_v55  ;;  %3725 = vmatpush3.bf16.msra.mxu1 %v1379_v56 }
 0x2e4   : > { %v1465_v58 = vpop.permute.xlu1 %1464  ;;  %v1463_v59 = vpop.permute.xlu0 %1462  ;;  %3730 = vmatprep.subr.bf16.mxu1 %v4078_v37 }
 0x2e5   : > { %v1470_v60 = vsel %vm430_vm10, %v1463_v59, %v1465_v58 }
 0x2e6   : > { %3519 = vmatmul.mubr.msk.bf16.vlgmr.msra.gmra.mrb[4].mxu0 %vm1367_vm8, %v3513_v57  ;;  %3727 = vmatmul.mubr.msk.bf16.vlgmr.msra.gmra.mrb[4].mxu1 %vm1367_vm8, %v3513_v57  ;;  %v1477_v2 = vsel %vm1371_vm9, %v1470_v60, 0 }
 0x2e7   : > { %1517 = vmatprep.mubr.bf16.mxu0 %v4077_v1  ;;  %3732 = vmatprep.mubr.msk.bf16.mxu1 %vm4080_vm6, %v4078_v37 }
 0x2e8   : > { %v1469_v61 = vpop.permute.xlu1 %1468  ;;  %v1467_v62 = vpop.permute.xlu0 %1466 }
 0x2e9   : > { %v1471_v63 = vsel %vm430_vm10, %v1465_v58, %v1467_v62  ;;  %v1472_v0 = vsel %vm430_vm10, %v1467_v62, %v1469_v61 }
 0x2ea   : > { %v1483_v3 = vsel %vm1371_vm9, %v1472_v0, 0  ;;  %3521 = vmatprep.subr.msk.bf16.mxu0 %vm1371_vm9, %v1471_v63 }
 0x2eb   : > { %1486 = vmatpush1.bf16.msra.mxu0 %v1477_v2  ;;  %3731 = vmatpush3.bf16.msra.mxu1 %v1483_v3 }
 0x2ec   : > { %v1571_v4 = vpop.permute.xlu1 %1570  ;;  %v1569_v5 = vpop.permute.xlu0 %1568  ;;  %3736 = vmatprep.subr.bf16.mxu1 %v4078_v37 }
 0x2ed   : > { %v1576_v7 = vsel %vm537_vm11, %v1569_v5, %v1571_v4 }
 0x2ee   : > { %v1583_v14 = vsel %vm1371_vm9, %v1576_v7, 0  ;;  %v3543_v7 = vld [vmem:[%s4785_s4 + $0x1e] sm:$0x3] }
 0x2f0   : > { %v1575_v8 = vpop.permute.xlu1 %1574  ;;  %v1573_v9 = vpop.permute.xlu0 %1572 }
 0x2f1   : > { %v1577_v10 = vsel %vm537_vm11, %v1571_v4, %v1573_v9  ;;  %v1578_v11 = vsel %vm537_vm11, %v1573_v9, %v1575_v8 }
 0x2f2   : > { %v1589_v12 = vsel %vm1371_vm9, %v1578_v11, 0  ;;  %3522 = vmatmul.mubr.msk.bf16.vlgmr.msra.gmra.mrb[4].mxu0 %vm1367_vm8, %v3512_v6  ;;  %3733 = vmatmul.mubr.msk.bf16.vlgmr.msra.gmra.mrb[4].mxu1 %vm1367_vm8, %v3512_v6 }
 0x2f3   : > { %3525 = vmatprep.subr.msk.bf16.mxu0 %vm1371_vm9, %v1577_v10  ;;  %3737 = vmatpush3.bf16.msra.mxu1 %v1589_v12 }
 0x2f4   : > { %1592 = vmatpush1.bf16.msra.mxu0 %v1583_v14  ;;  %v1680_v16 = vpop.permute.xlu1 %1679  ;;  %v1678_v20 = vpop.permute.xlu0 %1677  ;;  %1623 = vmatprep.mubr.bf16.mxu0 %v4077_v1  ;;  %v3547_v14 = vld [vmem:[%s4785_s4 + $0x20] sm:$0x3] }
 0x2f5   : > { %3738 = vmatprep.mubr.msk.bf16.mxu1 %vm4080_vm6, %v4078_v37  ;;  %3742 = vmatprep.subr.bf16.mxu1 %v4078_v37  ;;  %v1685_v25 = vsel %vm647_vm12, %v1678_v20, %v1680_v16 }
 0x2f6   : > { %v1692_v28 = vsel %vm1371_vm9, %v1685_v25, 0 }
 0x2f8   : > { %v1684_v21 = vpop.permute.xlu1 %1683  ;;  %v1682_v23 = vpop.permute.xlu0 %1681 }
 0x2f9   : > { %v1686_v24 = vsel %vm647_vm12, %v1680_v16, %v1682_v23  ;;  %v1687_v26 = vsel %vm647_vm12, %v1682_v23, %v1684_v21  ;;  %v3551_v21 = vld [vmem:[%s4785_s4 + $0x22] sm:$0x3] }
 0x2fa   : > { %3529 = vmatprep.subr.msk.bf16.mxu0 %vm1371_vm9, %v1686_v24  ;;  %v1698_v29 = vsel %vm1371_vm9, %v1687_v26, 0 }
 0x2fc   : > { %v1895_v30 = vpop.permute.xlu0 %1894  ;;  %v1897_v33 = vpop.permute.xlu1 %1896 }
 0x2fe   : > { %3526 = vmatmul.mubr.msk.bf16.vlgmr.msra.gmra.mrb[4].mxu0 %vm1367_vm8, %v3524_v27  ;;  %3739 = vmatmul.mubr.msk.bf16.vlgmr.msra.gmra.mrb[4].mxu1 %vm1367_vm8, %v3524_v27 }
 0x2ff   : > { %1701 = vmatpush1.bf16.msra.mxu0 %v1692_v28  ;;  %3743 = vmatpush3.bf16.msra.mxu1 %v1698_v29 }
 0x300   : > { %3536 = vmatprep.subr.msk.bf16.mxu0 %vm1371_vm9, %v4399_v41  ;;  %1732 = vmatprep.mubr.bf16.mxu0 %v4077_v1  ;;  %v1899_v31 = vpop.permute.xlu0 %1898  ;;  %v2001_v39 = vpop.permute.xlu1 %2000  ;;  %v1900_v41 = vsel %vm863_vm13, %v1895_v30, %v1897_v33 }
 0x301   : > { %3744 = vmatprep.mubr.msk.bf16.mxu1 %vm4080_vm6, %v4078_v37  ;;  %3748 = vmatprep.subr.bf16.mxu1 %v4078_v37  ;;  %v1901_v36 = vsel %vm863_vm13, %v1897_v33, %v1899_v31  ;;  %v1906_v44 = vsel %vm1371_vm9, %v1900_v41, 0  ;;  %v1912_v45 = vsel %vm1371_vm9, %v1899_v31, 0 }
 0x304   : > { %v2003_v38 = vpop.permute.xlu0 %2002  ;;  %v2005_v43 = vpop.permute.xlu1 %2004 }
 0x305   : > { %v2007_v46 = vsel %vm970_vm14, %v2003_v38, %v2005_v43  ;;  %v2006_v49 = vsel %vm970_vm14, %v2001_v39, %v2003_v38  ;;  %v2018_v53 = vsel %vm1371_vm9, %v2005_v43, 0 }
 0x306   : > { %v2012_v54 = vsel %vm1371_vm9, %v2006_v49, 0 }
 0x308   : > { %v2107_v40 = vpop.permute.xlu0 %2106  ;;  %v2109_v51 = vpop.permute.xlu1 %2108 }
 0x309   : > { %v2112_v4 = vsel %vm1077_vm15, %v2107_v40, %v2109_v51 }
 0x30a   : > { %3530 = vmatmul.mubr.msk.bf16.vlgmr.msra.gmra.mrb[4].mxu0 %vm1367_vm8, %v3528_v32  ;;  %3745 = vmatmul.mubr.msk.bf16.vlgmr.msra.gmra.mrb[4].mxu1 %vm1367_vm8, %v3528_v32  ;;  %v2118_v9 = vsel %vm1371_vm9, %v2112_v4, 0 }
 0x30b   : > { %1809 = vmatpush1.bf16.msra.mxu0 %v1800_v34  ;;  %3749 = vmatpush3.bf16.msra.mxu1 %v1806_v35 }
 0x30c   : > { %3540 = vmatprep.subr.msk.bf16.mxu0 %vm1371_vm9, %v1901_v36  ;;  %1840 = vmatprep.mubr.bf16.mxu0 %v4077_v1  ;;  %v2111_v47 = vpop.permute.xlu0 %2110  ;;  %v2213_v60 = vpop.permute.xlu1 %2212 }
 0x30d   : > { %3750 = vmatprep.mubr.msk.bf16.mxu1 %vm4080_vm6, %v4078_v37  ;;  %3754 = vmatprep.subr.bf16.mxu1 %v4078_v37  ;;  %v2113_v55 = vsel %vm1077_vm15, %v2109_v51, %v2111_v47  ;;  %v2124_v10 = vsel %vm1371_vm9, %v2111_v47, 0 }
 0x310   : > { %v2215_v48 = vpop.permute.xlu0 %2214  ;;  %v2217_v8 = vpop.permute.xlu1 %2216 }
 0x311   : > { %v2219_v11 = vsel %vm1184_vm1, %v2215_v48, %v2217_v8  ;;  %v2218_v12 = vsel %vm1184_vm1, %v2213_v60, %v2215_v48  ;;  %v2230_v16 = vsel %vm1371_vm9, %v2217_v8, 0 }
 0x312   : > { %v2224_v20 = vsel %vm1371_vm9, %v2218_v12, 0  ;;  %v3563_v12 = vld [vmem:[%s4785_s4 + $0x24] sm:$0x3] }
 0x316   : > { %3537 = vmatmul.mubr.msk.bf16.vlgmr.msra.gmra.mrb[4].mxu0 %vm1367_vm8, %v3532_v42  ;;  %3751 = vmatmul.mubr.msk.bf16.vlgmr.msra.gmra.mrb[4].mxu1 %vm1367_vm8, %v3532_v42 }
 0x317   : > { %1915 = vmatpush1.bf16.msra.mxu0 %v1906_v44  ;;  %3755 = vmatpush3.bf16.msra.mxu1 %v1912_v45 }
 0x318   : > { %3544 = vmatprep.subr.msk.bf16.mxu0 %vm1371_vm9, %v2007_v46  ;;  %1946 = vmatprep.mubr.bf16.mxu0 %v4077_v1 }
 0x319   : > { %3756 = vmatprep.mubr.msk.bf16.mxu1 %vm4080_vm6, %v4078_v37  ;;  %3760 = vmatprep.subr.bf16.mxu1 %v4078_v37 }
 0x321   : > { %v2331_v52 = vpop.permute.xlu0 %2330  ;;  %v2336_v31 = vpop.permute.xlu1 %2335 }
 0x322   : > { %3541 = vmatmul.mubr.msk.bf16.vlgmr.msra.gmra.mrb[4].mxu0 %vm1367_vm8, %v3539_v50  ;;  %3757 = vmatmul.mubr.msk.bf16.vlgmr.msra.gmra.mrb[4].mxu1 %vm1367_vm8, %v3539_v50  ;;  %v2338_v56 = vmul.f32 %v2331_v52, %v4365_v13  ;;  %v2339_v57 = vmul.f32 %v2331_v52, %v4368_v15  ;;  %v2340_v58 = vmul.f32 %v2331_v52, %v4373_v22  ;;  %v4062_v52 = vld [vmem:[#allocation2] ss:$16 sps:$4 sm:$0x3f]  }
 0x323   : > { %2021 = vmatpush1.bf16.msra.mxu0 %v2012_v54  ;;  %3761 = vmatpush3.bf16.msra.mxu1 %v2018_v53 }
 0x324   : > { %3548 = vmatprep.subr.msk.bf16.mxu0 %vm1371_vm9, %v2113_v55  ;;  %2052 = vmatprep.mubr.bf16.mxu0 %v4077_v1 }
 0x325   : > { %v2350_v59 = vpop.permute.xlu0 %2349  ;;  %3762 = vmatprep.mubr.msk.bf16.mxu1 %vm4080_vm6, %v4078_v37  ;;  %3766 = vmatprep.subr.bf16.mxu1 %v4078_v37  ;;  %v2355_v38 = vpop.permute.xlu1 %2354 }
 0x326   : > { %v2357_v61 = vadd.f32 %v2350_v59, %v2338_v56  ;;  %v2358_v62 = vadd.f32 %v2350_v59, %v2339_v57  ;;  %v2359_v63 = vadd.f32 %v2350_v59, %v2340_v58  ;;  %2423 = vrot.lane.b32.xlu0 %v4062_v52, %s4079_s9 }
 0x328   : > { %v2363_v0 = vmax.f32 %v2357_v61, 0.0  ;;  %v2364_v13 = vmax.f32 %v2358_v62, 0.0  ;;  %v2365_v2 = vmax.f32 %v2359_v63, 0.0 }
 0x32a   : > { %v2369_v15 = vsel %vm278_vm2, %v2363_v0, 0.0  ;;  %v2370_v22 = vsel %vm279_vm3, %v2364_v13, 0.0  ;;  %v2371_v3 = vsel %vm280_vm4, %v2365_v2, 0.0  ;;  %v3564_v2 = vld [vmem:[%s4785_s4 + $0x26] sm:$0x3] }
 0x32b   : > { %v4548_v5 = vpack.c.bf16 %v2370_v22, %v2369_v15  ;;  %v3613_v6 = vpack.c.bf16 %v2371_v3, %v2371_v3 }
 0x32d   : > { %2395 = vst [vmem:[#allocation2 + $0x4] sm:$0xff] %v4548_v5  ;;  %2396 = vst.msk [vmem:[#allocation2 + $0xc] sm:$0xf] %vm239_vm0, %v3613_v6 }
 0x32e   : > { %3545 = vmatmul.mubr.msk.bf16.vlgmr.msra.gmra.mrb[4].mxu0 %vm1367_vm8, %v3543_v7  ;;  %3763 = vmatmul.mubr.msk.bf16.vlgmr.msra.gmra.mrb[4].mxu1 %vm1367_vm8, %v3543_v7 }
 0x32f   : > { %2127 = vmatpush1.bf16.msra.mxu0 %v2118_v9  ;;  %3767 = vmatpush3.bf16.msra.mxu1 %v2124_v10 }
 0x330   : > { %3552 = vmatprep.subr.msk.bf16.mxu0 %vm1371_vm9, %v2219_v11  ;;  %2158 = vmatprep.mubr.bf16.mxu0 %v4077_v1 }
 0x331   : > { %3768 = vmatprep.mubr.msk.bf16.mxu1 %vm4080_vm6, %v4078_v37  ;;  %3772 = vmatprep.subr.bf16.mxu1 %v4078_v37 }
 0x33a   : > { %3549 = vmatmul.mubr.msk.bf16.vlgmr.msra.gmra.mrb[4].mxu0 %vm1367_vm8, %v3547_v14  ;;  %3769 = vmatmul.mubr.msk.bf16.vlgmr.msra.gmra.mrb[4].mxu1 %vm1367_vm8, %v3547_v14 }
 0x33b   : > { %2233 = vmatpush1.bf16.msra.mxu0 %v2224_v20  ;;  %3773 = vmatpush3.bf16.msra.mxu1 %v2230_v16 }
 0x33c   : > { %2264 = vmatprep.mubr.bf16.mxu0 %v4077_v1  ;;  %3774 = vmatprep.mubr.msk.bf16.mxu1 %vm4080_vm6, %v4078_v37 }
 0x33d   : > { %3778 = vmatprep.subr.bf16.mxu1 %v4078_v37 }
 0x346   : > { %3553 = vmatmul.mubr.msk.bf16.vlgmr.msra.gmra.mrb[4].mxu0 %vm1367_vm8, %v3551_v21  ;;  %3775 = vmatmul.mubr.msk.bf16.vlgmr.msra.gmra.mrb[4].mxu1 %vm1367_vm8, %v3551_v21 }
 0x347   : > { %2480 = vmatprep.mubr.bf16.mxu0 %v4077_v1  ;;  %3780 = vmatprep.mubr.msk.bf16.mxu1 %vm4080_vm6, %v4078_v37 }
 0x398   : > { %v2424_v57 = vpop.permute.xlu0 %2423 }
 0x419   : > { %v2266_v23 = vpop.f32.mrb[4].mxu0  ;;  %v2307_v24 = vpop.f32.mrb[4].mxu1 }
 0x41a   : > { %2316 = vst [vmem:[%s4145_s6 + $0x18] sm:$0xf] %v2266_v23  ;;  %2318 = vst.msk [vmem:[%s4145_s6 + $0x28] sm:$0xf] %vm239_vm0, %v2307_v24  ;;  %v2268_v25 = vpop.f32.mrb[5].mxu0  ;;  %v3776_v26 = vpop.f32.mrb[5].mxu1 }
 0x41b   : > { %2317 = vst [vmem:[%s4145_s6 + $0x20] sm:$0xf] %v2268_v25  ;;  %v2270_v27 = vpop.f32.mrb[6].mxu0  ;;  %v2310_v28 = vpop.f32.mrb[6].mxu1  ;;  %vm2438_vm0 = vcmask 1045504  }
 0x41c   : > { %v2271_v29 = vpop.f32.mrb[7].mxu0  ;;  %v3777_v30 = vpop.f32.mrb[7].mxu1 }
 0x421   : > { %v2322_v32 = vld [vmem:[%s4145_s6 + $0x18] sm:$0xf]  ;;  %v2324_v33 = vld [vmem:[%s4145_s6 + $0x28] sm:$0xf] }
 0x422   : > { %v2341_v34 = vmul.f32 %v2336_v31, %v2322_v32  ;;  %v2343_v35 = vmul.f32 %v2336_v31, %v2324_v33  ;;  %v2323_v36 = vld [vmem:[%s4145_s6 + $0x20] sm:$0xf]  ;;  %v3575_v32 = vld [vmem:[%s4785_s4 + $0x28] sm:$0x3] }
 0x423   : > { %v2342_v39 = vmul.f32 %v2336_v31, %v2323_v36  ;;  %v3579_v36 = vld [vmem:[%s4785_s4 + $0x2a] sm:$0x3] }
 0x424   : > { %v2360_v40 = vadd.f32 %v2355_v38, %v2341_v34  ;;  %v2362_v41 = vadd.f32 %v2355_v38, %v2343_v35 }
 0x425   : > { %v2361_v42 = vadd.f32 %v2355_v38, %v2342_v39 }
 0x426   : > { %v2366_v43 = vmax.f32 %v2360_v40, 0.0  ;;  %v2368_v44 = vmax.f32 %v2362_v41, 0.0 }
 0x427   : > { %v2367_v45 = vmax.f32 %v2361_v42, 0.0 }
 0x428   : > { %v2372_v46 = vsel %vm278_vm2, %v2366_v43, 0.0  ;;  %v2374_v47 = vsel %vm280_vm4, %v2368_v44, 0.0  ;;  %vm2434_vm2 = vcmask 97280  }
 0x429   : > { %v3615_v48 = vpack.c.bf16 %v2374_v47, %v2374_v47  ;;  %v2373_v49 = vsel %vm279_vm3, %v2367_v45, 0.0  ;;  %v3583_v45 = vld [vmem:[%s4785_s4 + $0x2c] sm:$0x3]  ;;  %vm4788_vm3 = vcmask 556036  }
 0x42a   : > { %v3614_v50 = vpack.c.bf16 %v2373_v49, %v2372_v46 }
 0x42b   : > { %2398 = vst.msk [vmem:[#allocation2 + $0x1c] sm:$0x3] %vm298_vm5, %v3615_v48 }
 0x42c   : > { %2397 = vst [vmem:[#allocation2 + $0x14] sm:$0x33] %v3614_v50 }
 0x432   : > { %v4063_v53 = vld [vmem:[#allocation2 + $0xc] ss:$16 sps:$4 sm:$0x3f]  }
 0x433   : > { %v4060_v51 = vld [vmem:[#allocation2 + $0x4] ss:$16 sps:$4 sm:$0x3f]   ;;  %v4065_v17 = vld [vmem:[#allocation2 + $0x8] ss:$16 sps:$4 sm:$0x3f]  }
 0x434   : > { %2425 = vrot.lane.b32.xlu1 %v4060_v51, %s4079_s9  ;;  %2427 = vrot.lane.b32.xlu0 %v4065_v17, %s4079_s9  ;;  %v2855_v18 = vld [vmem:[#allocation2 + $0x14] sm:$0x33]  ;;  %v4625_v55 = vld [vmem:[#allocation2 + $0xc] ss:$16 sps:$4 sm:$0x3f]  }
 0x435   : > { %v4616_v19 = vcombine.high %v4548_v5, %v2855_v18  ;;  %v4619_v54 = vcombine.low %v4548_v5, %v2855_v18  ;;  %v2880_v41 = vsel %vm2438_vm0, %v4625_v55, 0 }
 0x437   : > { %v2874_v40 = vsel %vm2438_vm0, %v4619_v54, 0 }
 0x438   : > { %2429 = vrot.lane.b32.xlu1 %v4063_v53, %s4079_s9  ;;  %2529 = vrot.lane.b32.xlu0 %v4062_v52, %s4081_s10 }
 0x43c   : > { %2531 = vrot.lane.b32.xlu1 %v4060_v51, %s4081_s10  ;;  %2533 = vrot.lane.b32.xlu0 %v4065_v17, %s4081_s10 }
 0x440   : > { %2535 = vrot.lane.b32.xlu1 %v4063_v53, %s4081_s10  ;;  %2635 = vrot.lane.b32.xlu0 %v4062_v52, %s4082_s11 }
 0x444   : > { %2637 = vrot.lane.b32.xlu1 %v4060_v51, %s4082_s11  ;;  %2639 = vrot.lane.b32.xlu0 %v4065_v17, %s4082_s11 }
 0x448   : > { %2641 = vrot.lane.b32.xlu1 %v4063_v53, %s4082_s11  ;;  %2744 = vrot.lane.b32.xlu0 %v4062_v52, %s4083_s12 }
 0x44c   : > { %2746 = vrot.lane.b32.xlu1 %v4060_v51, %s4083_s12  ;;  %2748 = vrot.lane.b32.xlu0 %v4065_v17, %s4083_s12 }
 0x450   : > { %2750 = vrot.lane.b32.xlu1 %v4063_v53, %s4083_s12  ;;  %2968 = vrot.lane.b32.xlu0 %v4619_v54, %s4084_s13  ;;  %v3590_v53 = vld [vmem:[%s4785_s4 + $0x2e] sm:$0x3] }
 0x454   : > { %2970 = vrot.lane.b32.xlu1 %v4616_v19, %s4084_s13  ;;  %2972 = vrot.lane.b32.xlu0 %v4625_v55, %s4084_s13 }
 0x458   : > { %3074 = vrot.lane.b32.xlu1 %v4619_v54, %s4085_s14  ;;  %3076 = vrot.lane.b32.xlu0 %v4616_v19, %s4085_s14 }
 0x45c   : > { %3078 = vrot.lane.b32.xlu1 %v4625_v55, %s4085_s14  ;;  %3180 = vrot.lane.b32.xlu0 %v4619_v54, %s4086_s15 }
 0x460   : > { %3182 = vrot.lane.b32.xlu1 %v4616_v19, %s4086_s15  ;;  %3184 = vrot.lane.b32.xlu0 %v4625_v55, %s4086_s15 }
 0x464   : > { %3286 = vrot.lane.b32.xlu1 %v4619_v54, %s4087_s16  ;;  %3288 = vrot.lane.b32.xlu0 %v4616_v19, %s4087_s16 }
 0x468   : > { %3290 = vrot.lane.b32.xlu1 %v4625_v55, %s4087_s16 }
 0x4a6   : > { %v2426_v56 = vpop.permute.xlu1 %2425  ;;  %v2428_v60 = vpop.permute.xlu0 %2427 }
 0x4a7   : > { %v2431_v58 = vsel %vm323_vm7, %v2424_v57, %v2426_v56  ;;  %v2432_v61 = vsel %vm323_vm7, %v2426_v56, %v2428_v60 }
 0x4a8   : > { %v2440_v63 = vsel %vm2438_vm0, %v2431_v58, 0  ;;  %3569 = vmatprep.subr.msk.bf16.mxu0 %vm2438_vm0, %v2432_v61  ;;  %v3594_v58 = vld [vmem:[%s4785_s4 + $0x30] sm:$0x3] }
 0x4a9   : > { %2449 = vmatpush1.bf16.msra.mxu0 %v2440_v63 }
 0x4aa   : > { %v2430_v59 = vpop.permute.xlu1 %2429  ;;  %v2530_v15 = vpop.permute.xlu0 %2529 }
 0x4ab   : > { %v2433_v62 = vsel %vm323_vm7, %v2428_v60, %v2430_v59 }
 0x4ac   : > { %v2446_v0 = vsel %vm2438_vm0, %v2433_v62, 0  ;;  %3570 = vmatmul.mubr.msk.bf16.vlgmr.msra.gmra.mrb[8].mxu0 %vm2434_vm2, %v3564_v2 }
 0x4ad   : > { %3779 = vmatpush3.bf16.msra.mxu1 %v2446_v0  ;;  %2584 = vmatprep.mubr.bf16.mxu0 %v4077_v1 }
 0x4ae   : > { %v2532_v13 = vpop.permute.xlu1 %2531  ;;  %3784 = vmatprep.subr.bf16.mxu1 %v4078_v37  ;;  %v2534_v4 = vpop.permute.xlu0 %2533 }
 0x4af   : > { %v2537_v22 = vsel %vm430_vm10, %v2530_v15, %v2532_v13  ;;  %v2538_v5 = vsel %vm430_vm10, %v2532_v13, %v2534_v4  ;;  %v3598_v13 = vld [vmem:[%s4785_s4 + $0x32] sm:$0x3] }
 0x4b0   : > { %3781 = vmatmul.mubr.msk.bf16.vlgmr.msra.gmra.mrb[8].mxu1 %vm2434_vm2, %v3564_v2  ;;  %v2544_v7 = vsel %vm2438_vm0, %v2537_v22, 0  ;;  %3572 = vmatprep.subr.msk.bf16.mxu0 %vm2438_vm0, %v2538_v5  ;;  %v3602_v22 = vld [vmem:[%s4785_s4 + $0x34] sm:$0x3] }
 0x4b1   : > { %3786 = vmatprep.mubr.msk.bf16.mxu1 %vm4080_vm6, %v4078_v37  ;;  %2553 = vmatpush1.bf16.msra.mxu0 %v2544_v7 }
 0x4b2   : > { %v2536_v3 = vpop.permute.xlu1 %2535  ;;  %v2636_v10 = vpop.permute.xlu0 %2635 }
 0x4b3   : > { %v2539_v6 = vsel %vm430_vm10, %v2534_v4, %v2536_v3 }
 0x4b4   : > { %v2550_v8 = vsel %vm2438_vm0, %v2539_v6, 0 }
 0x4b5   : > { %3785 = vmatpush3.bf16.msra.mxu1 %v2550_v8 }
 0x4b6   : > { %v2638_v9 = vpop.permute.xlu1 %2637  ;;  %3790 = vmatprep.subr.bf16.mxu1 %v4078_v37  ;;  %v2640_v16 = vpop.permute.xlu0 %2639 }
 0x4b7   : > { %v2643_v14 = vsel %vm537_vm11, %v2636_v10, %v2638_v9  ;;  %v2644_v20 = vsel %vm537_vm11, %v2638_v9, %v2640_v16 }
 0x4b8   : > { %3573 = vmatmul.mubr.msk.bf16.vlgmr.msra.gmra.mrb[8].mxu0 %vm2434_vm2, %v3563_v12  ;;  %v2650_v24 = vsel %vm2438_vm0, %v2643_v14, 0  ;;  %3576 = vmatprep.subr.msk.bf16.mxu0 %vm2438_vm0, %v2644_v20 }
 0x4b9   : > { %2659 = vmatpush1.bf16.msra.mxu0 %v2650_v24  ;;  %2690 = vmatprep.mubr.bf16.mxu0 %v4077_v1 }
 0x4ba   : > { %v2642_v11 = vpop.permute.xlu1 %2641  ;;  %v2745_v26 = vpop.permute.xlu0 %2744 }
 0x4bb   : > { %v2645_v21 = vsel %vm537_vm11, %v2640_v16, %v2642_v11 }
 0x4bc   : > { %v2656_v23 = vsel %vm2438_vm0, %v2645_v21, 0  ;;  %3787 = vmatmul.mubr.msk.bf16.vlgmr.msra.gmra.mrb[8].mxu1 %vm2434_vm2, %v3563_v12 }
 0x4bd   : > { %3791 = vmatpush3.bf16.msra.mxu1 %v2656_v23  ;;  %3792 = vmatprep.mubr.msk.bf16.mxu1 %vm4080_vm6, %v4078_v37 }
 0x4be   : > { %v2747_v25 = vpop.permute.xlu1 %2746  ;;  %3796 = vmatprep.subr.bf16.mxu1 %v4078_v37  ;;  %v2749_v28 = vpop.permute.xlu0 %2748 }
 0x4bf   : > { %v2753_v29 = vsel %vm647_vm12, %v2747_v25, %v2749_v28  ;;  %v2752_v30 = vsel %vm647_vm12, %v2745_v26, %v2747_v25 }
 0x4c0   : > { %3580 = vmatprep.subr.msk.bf16.mxu0 %vm2438_vm0, %v2753_v29  ;;  %v2759_v33 = vsel %vm2438_vm0, %v2752_v30, 0 }
 0x4c2   : > { %v2751_v27 = vpop.permute.xlu1 %2750  ;;  %v2969_v35 = vpop.permute.xlu0 %2968 }
 0x4c3   : > { %v2754_v31 = vsel %vm647_vm12, %v2749_v28, %v2751_v27 }
 0x4c4   : > { %v2765_v34 = vsel %vm2438_vm0, %v2754_v31, 0  ;;  %3577 = vmatmul.mubr.msk.bf16.vlgmr.msra.gmra.mrb[8].mxu0 %vm2434_vm2, %v3575_v32 }
 0x4c5   : > { %2768 = vmatpush1.bf16.msra.mxu0 %v2759_v33  ;;  %2799 = vmatprep.mubr.bf16.mxu0 %v4077_v1 }
 0x4c6   : > { %3587 = vmatprep.subr.msk.bf16.mxu0 %vm2438_vm0, %v4616_v19  ;;  %v2971_v38 = vpop.permute.xlu1 %2970  ;;  %v2973_v39 = vpop.permute.xlu0 %2972 }
 0x4c7   : > { %v2975_v42 = vsel %vm863_vm13, %v2971_v38, %v2973_v39  ;;  %v2974_v44 = vsel %vm863_vm13, %v2969_v35, %v2971_v38  ;;  %v2986_v49 = vsel %vm2438_vm0, %v2973_v39, 0 }
 0x4c8   : > { %3793 = vmatmul.mubr.msk.bf16.vlgmr.msra.gmra.mrb[8].mxu1 %vm2434_vm2, %v3575_v32  ;;  %v2980_v48 = vsel %vm2438_vm0, %v2974_v44, 0 }
 0x4c9   : > { %3797 = vmatpush3.bf16.msra.mxu1 %v2765_v34  ;;  %3798 = vmatprep.mubr.msk.bf16.mxu1 %vm4080_vm6, %v4078_v37 }
 0x4ca   : > { %3802 = vmatprep.subr.bf16.mxu1 %v4078_v37  ;;  %v3075_v43 = vpop.permute.xlu1 %3074  ;;  %v3077_v47 = vpop.permute.xlu0 %3076 }
 0x4cb   : > { %v3080_v52 = vsel %vm970_vm14, %v3075_v43, %v3077_v47 }
 0x4cc   : > { %v3086_v54 = vsel %vm2438_vm0, %v3080_v52, 0 }
 0x4ce   : > { %v3079_v46 = vpop.permute.xlu1 %3078  ;;  %v3181_v51 = vpop.permute.xlu0 %3180 }
 0x4cf   : > { %v3081_v50 = vsel %vm970_vm14, %v3077_v47, %v3079_v46  ;;  %v3092_v19 = vsel %vm2438_vm0, %v3079_v46, 0 }
 0x4d0   : > { %3581 = vmatmul.mubr.msk.bf16.vlgmr.msra.gmra.mrb[8].mxu0 %vm2434_vm2, %v3579_v36 }
 0x4d1   : > { %2883 = vmatpush1.bf16.msra.mxu0 %v2874_v40  ;;  %2914 = vmatprep.mubr.bf16.mxu0 %v4077_v1 }
 0x4d2   : > { %3591 = vmatprep.subr.msk.bf16.mxu0 %vm2438_vm0, %v2975_v42  ;;  %v3183_v17 = vpop.permute.xlu1 %3182  ;;  %v3185_v18 = vpop.permute.xlu0 %3184 }
 0x4d3   : > { %v3187_v55 = vsel %vm1077_vm15, %v3183_v17, %v3185_v18  ;;  %v3186_v57 = vsel %vm1077_vm15, %v3181_v51, %v3183_v17  ;;  %v3198_v62 = vsel %vm2438_vm0, %v3185_v18, 0 }
 0x4d4   : > { %3799 = vmatmul.mubr.msk.bf16.vlgmr.msra.gmra.mrb[8].mxu1 %vm2434_vm2, %v3579_v36  ;;  %v3192_v61 = vsel %vm2438_vm0, %v3186_v57, 0 }
 0x4d5   : > { %3803 = vmatpush3.bf16.msra.mxu1 %v2880_v41  ;;  %3804 = vmatprep.mubr.msk.bf16.mxu1 %vm4080_vm6, %v4078_v37 }
 0x4d6   : > { %3808 = vmatprep.subr.bf16.mxu1 %v4078_v37  ;;  %v3287_v56 = vpop.permute.xlu1 %3286  ;;  %v3289_v60 = vpop.permute.xlu0 %3288 }
 0x4d7   : > { %v3292_v0 = vsel %vm1184_vm1, %v3287_v56, %v3289_v60 }
 0x4d8   : > { %v3298_v15 = vsel %vm2438_vm0, %v3292_v0, 0 }
 0x4da   : > { %v3291_v59 = vpop.permute.xlu1 %3290 }
 0x4db   : > { %v3293_v63 = vsel %vm1184_vm1, %v3289_v60, %v3291_v59  ;;  %v3304_v2 = vsel %vm2438_vm0, %v3291_v59, 0 }
 0x4dc   : > { %3588 = vmatmul.mubr.msk.bf16.vlgmr.msra.gmra.mrb[8].mxu0 %vm2434_vm2, %v3583_v45 }
 0x4dd   : > { %2989 = vmatpush1.bf16.msra.mxu0 %v2980_v48  ;;  %3020 = vmatprep.mubr.bf16.mxu0 %v4077_v1 }
 0x4de   : > { %3595 = vmatprep.subr.msk.bf16.mxu0 %vm2438_vm0, %v3081_v50 }
 0x4e0   : > { %3805 = vmatmul.mubr.msk.bf16.vlgmr.msra.gmra.mrb[8].mxu1 %vm2434_vm2, %v3583_v45 }
 0x4e1   : > { %3809 = vmatpush3.bf16.msra.mxu1 %v2986_v49  ;;  %3810 = vmatprep.mubr.msk.bf16.mxu1 %vm4080_vm6, %v4078_v37 }
 0x4e2   : > { %3814 = vmatprep.subr.bf16.mxu1 %v4078_v37 }
 0x4e8   : > { %3592 = vmatmul.mubr.msk.bf16.vlgmr.msra.gmra.mrb[8].mxu0 %vm2434_vm2, %v3590_v53 }
 0x4e9   : > { %3095 = vmatpush1.bf16.msra.mxu0 %v3086_v54  ;;  %3126 = vmatprep.mubr.bf16.mxu0 %v4077_v1 }
 0x4ea   : > { %3599 = vmatprep.subr.msk.bf16.mxu0 %vm2438_vm0, %v3187_v55 }
 0x4ec   : > { %3811 = vmatmul.mubr.msk.bf16.vlgmr.msra.gmra.mrb[8].mxu1 %vm2434_vm2, %v3590_v53 }
 0x4ed   : > { %3815 = vmatpush3.bf16.msra.mxu1 %v3092_v19  ;;  %3816 = vmatprep.mubr.msk.bf16.mxu1 %vm4080_vm6, %v4078_v37 }
 0x4ee   : > { %3820 = vmatprep.subr.bf16.mxu1 %v4078_v37 }
 0x4f4   : > { %3596 = vmatmul.mubr.msk.bf16.vlgmr.msra.gmra.mrb[8].mxu0 %vm2434_vm2, %v3594_v58 }
 0x4f5   : > { %3201 = vmatpush1.bf16.msra.mxu0 %v3192_v61  ;;  %3232 = vmatprep.mubr.bf16.mxu0 %v4077_v1 }
 0x4f6   : > { %3603 = vmatprep.subr.msk.bf16.mxu0 %vm2438_vm0, %v3293_v63 }
 0x4f8   : > { %3817 = vmatmul.mubr.msk.bf16.vlgmr.msra.gmra.mrb[8].mxu1 %vm2434_vm2, %v3594_v58 }
 0x4f9   : > { %3821 = vmatpush3.bf16.msra.mxu1 %v3198_v62  ;;  %3822 = vmatprep.mubr.msk.bf16.mxu1 %vm4080_vm6, %v4078_v37 }
 0x4fa   : > { %3826 = vmatprep.subr.bf16.mxu1 %v4078_v37 }
 0x500   : > { %3600 = vmatmul.mubr.msk.bf16.vlgmr.msra.gmra.mrb[8].mxu0 %vm2434_vm2, %v3598_v13 }
 0x501   : > { %3307 = vmatpush1.bf16.msra.mxu0 %v3298_v15  ;;  %3338 = vmatprep.mubr.bf16.mxu0 %v4077_v1 }
 0x504   : > { %3823 = vmatmul.mubr.msk.bf16.vlgmr.msra.gmra.mrb[8].mxu1 %vm2434_vm2, %v3598_v13 }
 0x505   : > { %3827 = vmatpush3.bf16.msra.mxu1 %v3304_v2  ;;  %3828 = vmatprep.mubr.msk.bf16.mxu1 %vm4080_vm6, %v4078_v37 }
 0x50c   : > { %3604 = vmatmul.mubr.msk.bf16.vlgmr.msra.gmra.mrb[8].mxu0 %vm2434_vm2, %v3602_v22 }
 0x510   : > { %3829 = vmatmul.mubr.msk.bf16.vlgmr.msra.gmra.mrb[8].mxu1 %vm2434_vm2, %v3602_v22 }
 0x5df   : > { %v3340_v3 = vpop.f32.mrb[8].mxu0 }
 0x5e0   : > { %v3393_v5 = vrot.slane %v3340_v3, 4  ;;  %v3342_v7 = vpop.f32.mrb[9].mxu0 }
 0x5e1   : > { %v3394_v9 = vrot.slane %v3342_v7, 4  ;;  %v3344_v1 = vpop.f32.mrb[10].mxu0 }
 0x5e2   : > { %3399 = vst [vmem:[%s4145_s6 + $0x18] sm:$0xf0] %v3393_v5  ;;  %v3345_v37 = vpop.f32.mrb[11].mxu0 }
 0x5e3   : > { %v3381_v4 = vpop.f32.mrb[8].mxu1  ;;  %3400 = vst [vmem:[%s4145_s6 + $0x20] sm:$0xf0] %v3394_v9 }
 0x5e4   : > { %v3395_v6 = vrot.slane %v3381_v4, 4  ;;  %v3830_v8 = vpop.f32.mrb[9].mxu1 }
 0x5e5   : > { %v3384_v10 = vpop.f32.mrb[10].mxu1 }
 0x5e6   : > { %3401 = vst.msk [vmem:[%s4145_s6 + $0x28] sm:$0xf0] %vm4788_vm3, %v3395_v6  ;;  %v3831_v11 = vpop.f32.mrb[11].mxu1 }
 0x5e7 PF: > { %s15_s18 = sadd.s32 1, %s4075_s18  }
 0x5e8   : > { %p12_p4 = scmp.ge.s32.totalorder %s15_s18, 4  }
 0x5ea   :  { %14 = sbr.rel (!%p12_p4) target bundleno = 1 (0x1), region = 100 }

</bundles_post_ra>
